<compile_context>
chip_gen: v6e
topology: v6e:2x2x1
jax: 0.10.0
libtpu: 0.0.40
codegen_flags: <defaults>
</compile_context>

<pallas_src>
import functools

import jax
import jax.numpy as jnp
from jax.experimental import pallas as pl
from jax.experimental.pallas import tpu as pltpu


# --------------------------------- kernel ----------------------------------

def rnn2stream2map_kernel(
    # data
    x_ref, h0_ref,
    # packed weights / biases (weights bf16 for the MXU, biases f32)
    w1_ref, b1_ref,            # fused xy|pix embedding
    w2_ref, b2_ref,            # merged [shape_readout | joint_embedding]
    wrx_ref, wrh_ref, br_ref,  # RNN i2h|i2o split into input rows / hidden rows
    wm_ref, bm_ref,            # [map_count | map_dist | map_all | pad]
    wam_ref, bam_ref,          # after_map block diagonal (padded)
    wnum_ref, bnum_ref,        # [num_count | num_dist | num_all]
    # outputs
    slab_ref, hid_ref,
    # scratch
    xpre_ref, rout_ref,
    *, T, B, H, NS, M3, NUM, SLAB):

    def mm(a, w_ref):
        # bf16 MXU operands, f32 accumulation; element-wise math stays f32.
        return jnp.dot(a.astype(w_ref.dtype), w_ref[...],
                       preferred_element_type=jnp.float32)

    def lrelu(v):  # LeakyReLU(0.1)
        return jnp.where(v > 0, v, 0.1 * v)

    # ---------------- batched pre-phase over all T*B rows -------------------
    x = x_ref[...].astype(jnp.float32)                      # (TB, xy+pix)
    emb = lrelu(mm(x, w1_ref) + b1_ref[...])                # (TB, H) = [xy_e|pix_e]

    sx = mm(emb, w2_ref) + b2_ref[...]                      # (TB, NS+H)
    shape = sx[:, :NS]                                      # shape readout (linear)
    xj = lrelu(sx[:, NS:])                                  # joint embedding

    # Input half of the RNN cell (bias folded in), batched for every timestep.
    xpre_ref[...] = mm(xj, wrx_ref) + br_ref[...]           # (TB, 2H)

    # ---------------- serial recurrence (only h @ wr_h + tanh) --------------
    # TODO(synk): tanh assumed for both i2h and i2o of the undefined RNN class.
    def step(t, h):
        row = t * B
        pre = xpre_ref[pl.ds(row, B), :]                    # (B, 2H)
        rz = jnp.tanh(mm(h, wrh_ref) + pre)                 # (B, 2H) f32
        rout_ref[pl.ds(row, B), :] = rz[:, H:]              # rnn output stream
        return rz[:, :H]                                    # new hidden carry

    h_final = jax.lax.fori_loop(0, T, step,
                                h0_ref[...].astype(jnp.float32), unroll=True)
    hid_ref[...] = h_final.astype(hid_ref.dtype)            # written exactly once

    # ---------------- batched post-phase over all T*B rows ------------------
    rout = rout_ref[...]                                     # (TB, H)
    maps3 = mm(rout, wm_ref) + bm_ref[...]                   # (TB, MP>=128)
    sig3 = jax.nn.sigmoid(maps3)                             # dropout p=0, no detach
    penult3 = lrelu(mm(sig3, wam_ref) + bam_ref[...])        # (TB, MP)
    num3 = mm(penult3, wnum_ref) + bnum_ref[...]             # (TB, NUM)

    # One lane-dense output slab: [num | shape | maps | zero pad] -> (TB, SLAB)
    tb = num3.shape[0]
    pad = SLAB - (NUM + NS + M3)
    pieces = [num3, shape, maps3[:, :M3]]
    if pad > 0:
        pieces.append(jnp.zeros((tb, pad), jnp.float32))
    slab_ref[...] = jnp.concatenate(pieces, axis=-1).astype(slab_ref.dtype)


# ----------------------------- param handling -------------------------------

def init_params(key, *, pix_size, xy_size, hidden_size, n_shapes, map_size,
                output_size):
    """Raw per-layer params; weights stored as (in, out)."""
    H2, H, NS, M = hidden_size // 2, hidden_size, n_shapes, map_size
    shapes = {
        'xy_w': (xy_size, H2), 'xy_b': (H2,),
        'pix_w': (pix_size, H2), 'pix_b': (H2,),
        'sr_w': (H2, NS), 'sr_b': (NS,),
        'joint_w': (NS + H, H), 'joint_b': (H,),
        'i2h_w': (2 * H, H), 'i2h_b': (H,),
        'i2o_w': (2 * H, H), 'i2o_b': (H,),
        'mr_w': (H, M), 'mr_b': (M,),
        'md_w': (H, M), 'md_b': (M,),
        'ac_w': (M, M), 'ac_b': (M,),
        'ad_w': (M, M), 'ad_b': (M,),
        'aa_w': (M, M), 'aa_b': (M,),
        'nc_w': (M, output_size), 'nc_b': (output_size,),
        'nd_w': (M, 3), 'nd_b': (3,),
        'na_w': (M, output_size + 2), 'na_b': (output_size + 2,),
    }
    params = {}
    for i, (name, shp) in enumerate(shapes.items()):
        params[name] = 0.1 * jax.random.normal(
            jax.random.fold_in(key, i), shp, dtype=jnp.float32)
    return params


def pack_params(p, *, pix_size, xy_size, hidden_size, n_shapes, map_size,
                output_size, mxu_dtype=jnp.bfloat16):
    """Pre-pack weights so the kernel needs no lane-dim concats for compute."""
    H2, H, NS, M = hidden_size // 2, hidden_size, n_shapes, map_size
    O = output_size
    M3 = 3 * M
    MP = ((M3 + 127) // 128) * 128       # pad map lanes to a multiple of 128
    NUM = O + 3 + O + 2

    # 1) fused xy/pix embedding: x = [xy | pix] -> emb = [xy_emb | pix_emb]
    w1 = jnp.zeros((xy_size + pix_size, H), jnp.float32)
    w1 = w1.at[:xy_size, :H2].set(p['xy_w'])
    w1 = w1.at[xy_size:, H2:].set(p['pix_w'])
    b1 = jnp.concatenate([p['xy_b'], p['pix_b']])[None, :]

    # 2) merged shape_readout + joint_embedding.  PyTorch combined order is
    #    [shape, xy_emb, pix_emb]; fold the (linear) shape readout through joint.
    j_shape = p['joint_w'][:NS]
    j_xy = p['joint_w'][NS:NS + H2]
    j_pix = p['joint_w'][NS + H2:]
    w2 = jnp.zeros((H, NS + H), jnp.float32)
    w2 = w2.at[H2:, :NS].set(p['sr_w'])                    # shape readout (pix rows)
    w2 = w2.at[:H2, NS:].set(j_xy)
    w2 = w2.at[H2:, NS:].set(p['sr_w'] @ j_shape + j_pix)
    b2 = jnp.concatenate([p['sr_b'], p['sr_b'] @ j_shape + p['joint_b']])[None, :]

    # 3) RNN: PyTorch comb = cat(x, hidden); split i2h|i2o by input/hidden rows.
    #    Output cols = [new_hidden(0:H) | rnn_out(H:2H)]
    wrx = jnp.concatenate([p['i2h_w'][:H], p['i2o_w'][:H]], axis=1)   # (H, 2H)
    wrh = jnp.concatenate([p['i2h_w'][H:], p['i2o_w'][H:]], axis=1)   # (H, 2H)
    br = jnp.concatenate([p['i2h_b'], p['i2o_b']])[None, :]

    # 4) maps = [map_count | map_dist | map_all | pad], driven by rnn_out only
    wm = jnp.zeros((H, MP), jnp.float32)
    wm = wm.at[:, :M].set(p['mr_w'])
    wm = wm.at[:, M:2 * M].set(p['md_w'])
    wm = wm.at[:, 2 * M:M3].set(p['mr_w'] + p['md_w'])
    bm = jnp.zeros((1, MP), jnp.float32).at[0, :M3].set(
        jnp.concatenate([p['mr_b'], p['md_b'], p['mr_b'] + p['md_b']]))

    # 5) after_map block-diagonal (padded rows/cols stay zero so the sigmoid(0)
    #    = 0.5 garbage in the padding lanes cannot leak into real outputs)
    wam = jnp.zeros((MP, MP), jnp.float32)
    wam = wam.at[:M, :M].set(p['ac_w'])
    wam = wam.at[M:2 * M, M:2 * M].set(p['ad_w'])
    wam = wam.at[2 * M:M3, 2 * M:M3].set(p['aa_w'])
    bam = jnp.zeros((1, MP), jnp.float32).at[0, :M3].set(
        jnp.concatenate([p['ac_b'], p['ad_b'], p['aa_b']]))

    # 6) num readouts: [num_count(O) | num_dist(3) | num_all(O+2)]
    wnum = jnp.zeros((MP, NUM), jnp.float32)
    wnum = wnum.at[:M, :O].set(p['nc_w'])
    wnum = wnum.at[M:2 * M, O:O + 3].set(p['nd_w'])
    wnum = wnum.at[2 * M:M3, O + 3:].set(p['na_w'])
    bnum = jnp.concatenate([p['nc_b'], p['nd_b'], p['na_b']])[None, :]

    c = lambda w: w.astype(mxu_dtype)
    return dict(w1=c(w1), b1=b1, w2=c(w2), b2=b2,
                wrx=c(wrx), wrh=c(wrh), br=br,
                wm=c(wm), bm=bm, wam=c(wam), bam=bam,
                wnum=c(wnum), bnum=bnum)


_PACKED_ORDER = ['w1', 'b1', 'w2', 'b2', 'wrx', 'wrh', 'br',
                 'wm', 'bm', 'wam', 'bam', 'wnum', 'bnum']


# ------------------------------ python wrapper -------------------------------

def rnn_classifier_forward(x_seq, hidden0, packed, *, hidden_size, n_shapes,
                           map_size, output_size):
    """Runs the cell over all T steps in ONE pallas_call invocation (no grid).
    Returns per-step outputs matching the PyTorch module:
    (all_num, shape, all_maps, hidden)."""
    T, B, in_dim = x_seq.shape
    H, NS, M, O = hidden_size, n_shapes, map_size, output_size
    M3 = 3 * M
    NUM = O + 3 + O + 2
    TB = T * B
    SLAB = ((NUM + NS + M3 + 127) // 128) * 128   # lane-dense padded output slab

    flat = [packed[n] for n in _PACKED_ORDER]

    kernel = functools.partial(
        rnn2stream2map_kernel,
        T=T, B=B, H=H, NS=NS, M3=M3, NUM=NUM, SLAB=SLAB)

    slab, h_final = pl.pallas_call(
        kernel,
        out_shape=(jax.ShapeDtypeStruct((TB, SLAB), jnp.float32),
                   jax.ShapeDtypeStruct((B, H), jnp.float32)),
        scratch_shapes=[
            pltpu.VMEM((TB, 2 * H), jnp.float32),   # xpre: xj @ wr_x + b, all steps
            pltpu.VMEM((TB, H), jnp.float32),       # stacked rnn outputs
        ],
    )(x_seq.reshape(TB, in_dim), hidden0, *flat)

    slab = slab.reshape(T, B, SLAB)
    num3 = slab[..., :NUM]
    shape_out = slab[..., NUM:NUM + NS]
    maps3 = slab[..., NUM + NS:NUM + NS + M3]
    all_num = (num3[..., :O], num3[..., O:O + 3], num3[..., O + 3:])
    all_maps = (maps3[..., :M], maps3[..., M:2 * M], maps3[..., 2 * M:])
    return all_num, shape_out, all_maps, h_final


# ----------------------------- pure-JAX reference ----------------------------

def reference_forward(x_seq, h0, p, *, xy_size):
    """Layer-by-layer f32 reference mirroring the PyTorch forward."""
    def lrelu(v): return jnp.where(v > 0, v, 0.1 * v)
    hidden = h0
    nums, shapes, maps = [], [], []
    for t in range(x_seq.shape[0]):
        x = x_seq[t]
        xy_e = lrelu(x[:, :xy_size] @ p['xy_w'] + p['xy_b'])
        pix_e = lrelu(x[:, xy_size:] @ p['pix_w'] + p['pix_b'])
        shape = pix_e @ p['sr_w'] + p['sr_b']
        combined = jnp.concatenate([shape, xy_e, pix_e], axis=-1)
        xj = lrelu(combined @ p['joint_w'] + p['joint_b'])
        comb = jnp.concatenate([xj, hidden], axis=-1)
        hidden = jnp.tanh(comb @ p['i2h_w'] + p['i2h_b'])
        out = jnp.tanh(comb @ p['i2o_w'] + p['i2o_b'])
        map_count = out @ p['mr_w'] + p['mr_b']
        map_dist = out @ p['md_w'] + p['md_b']
        map_all = map_count + map_dist
        pc = lrelu(jax.nn.sigmoid(map_count) @ p['ac_w'] + p['ac_b'])
        pd = lrelu(jax.nn.sigmoid(map_dist) @ p['ad_w'] + p['ad_b'])
        pa = lrelu(jax.nn.sigmoid(map_all) @ p['aa_w'] + p['aa_b'])
        nums.append(jnp.concatenate(
            [pc @ p['nc_w'] + p['nc_b'], pd @ p['nd_w'] + p['nd_b'],
             pa @ p['na_w'] + p['na_b']], axis=-1))
        shapes.append(shape)
        maps.append(jnp.concatenate([map_count, map_dist, map_all], axis=-1))
    return jnp.stack(nums), jnp.stack(shapes), jnp.stack(maps), hidden


# ----------------------------------- main ------------------------------------

if __name__ == "__main__":
    B, T = 8, 8
    pix_size, xy_size = 16, 2
    hidden_size, n_shapes = 32, 20
    map_size, output_size = 36, 10

    key = jax.random.PRNGKey(0)
    kx, kp = jax.random.split(key)
    x_seq = jax.random.normal(kx, (T, B, xy_size + pix_size), dtype=jnp.float32)
    hidden0 = jnp.zeros((B, hidden_size), dtype=jnp.float32)   # initHidden

    raw = init_params(kp, pix_size=pix_size, xy_size=xy_size,
                      hidden_size=hidden_size, n_shapes=n_shapes,
                      map_size=map_size, output_size=output_size)
    packed = pack_params(raw, pix_size=pix_size, xy_size=xy_size,
                         hidden_size=hidden_size, n_shapes=n_shapes,
                         map_size=map_size, output_size=output_size,
                         mxu_dtype=jnp.bfloat16)

    all_num, shape_out, all_maps, h_final = rnn_classifier_forward(
        x_seq, hidden0, packed, hidden_size=hidden_size, n_shapes=n_shapes,
        map_size=map_size, output_size=output_size)
    jax.block_until_ready((all_num, shape_out, all_maps, h_final))

    # correctness check vs f32 layer-by-layer reference (bf16 MXU tolerance)
    ref_nums, ref_shapes, ref_maps, ref_hidden = reference_forward(
        x_seq, hidden0, raw, xy_size=xy_size)
    O, M = output_size, map_size
    checks = [
        (all_num[0], ref_nums[..., :O]),
        (all_num[1], ref_nums[..., O:O + 3]),
        (all_num[2], ref_nums[..., O + 3:]),
        (shape_out, ref_shapes),
        (all_maps[0], ref_maps[..., :M]),
        (all_maps[1], ref_maps[..., M:2 * M]),
        (all_maps[2], ref_maps[..., 2 * M:]),
        (h_final, ref_hidden),
    ]
    for got, want in checks:
        assert got.shape == want.shape, (got.shape, want.shape)
        assert float(jnp.max(jnp.abs(got - want))) < 5e-2

    print("KERNEL_OK")
</pallas_src>

<mosaic_0001>
module attributes {stable_mosaic.version = 11 : i64} {
  func.func @rnn2stream2map_kernel(%arg0: memref<64x18xf32, #tpu.memory_space<vmem>>, %arg1: memref<8x32xf32, #tpu.memory_space<vmem>>, %arg2: memref<18x32xbf16, #tpu.memory_space<vmem>>, %arg3: memref<1x32xf32, #tpu.memory_space<vmem>>, %arg4: memref<32x52xbf16, #tpu.memory_space<vmem>>, %arg5: memref<1x52xf32, #tpu.memory_space<vmem>>, %arg6: memref<32x64xbf16, #tpu.memory_space<vmem>>, %arg7: memref<32x64xbf16, #tpu.memory_space<vmem>>, %arg8: memref<1x64xf32, #tpu.memory_space<vmem>>, %arg9: memref<32x128xbf16, #tpu.memory_space<vmem>>, %arg10: memref<1x128xf32, #tpu.memory_space<vmem>>, %arg11: memref<128x128xbf16, #tpu.memory_space<vmem>>, %arg12: memref<1x128xf32, #tpu.memory_space<vmem>>, %arg13: memref<128x25xbf16, #tpu.memory_space<vmem>>, %arg14: memref<1x25xf32, #tpu.memory_space<vmem>>, %arg15: memref<64x256xf32, #tpu.memory_space<vmem>>, %arg16: memref<8x32xf32, #tpu.memory_space<vmem>>, %arg17: memref<64x64xf32, #tpu.memory_space<vmem>>, %arg18: memref<64x32xf32, #tpu.memory_space<vmem>>) attributes {dimension_semantics = [], scalar_prefetch = 0 : i64, scratch_operands = 2 : i64, tpu.core_type = #tpu.core_type<tc>} {
    %c0 = arith.constant 0 : index
    %c0_0 = arith.constant 0 : index
    %0 = vector.load %arg0[%c0, %c0_0] : memref<64x18xf32, #tpu.memory_space<vmem>>, vector<64x18xf32>
    %1 = arith.truncf %0 : vector<64x18xf32> to vector<64x18xbf16>
    %c0_1 = arith.constant 0 : index
    %c0_2 = arith.constant 0 : index
    %2 = vector.load %arg2[%c0_1, %c0_2] : memref<18x32xbf16, #tpu.memory_space<vmem>>, vector<18x32xbf16>
    %cst = arith.constant dense<0.000000e+00> : vector<64x32xf32>
    %3 = tpu.matmul %1, %2, %cst {dimension_numbers = #tpu.dot_dimension_numbers<[1], [0], [0], [1], [0, 0, 1, 1], [], []>} : vector<64x18xbf16>, vector<18x32xbf16>, vector<64x32xf32> -> vector<64x32xf32>
    %c0_3 = arith.constant 0 : index
    %c0_4 = arith.constant 0 : index
    %4 = vector.load %arg3[%c0_3, %c0_4] : memref<1x32xf32, #tpu.memory_space<vmem>>, vector<1x32xf32>
    %5 = vector.broadcast %4 : vector<1x32xf32> to vector<64x32xf32>
    %6 = arith.addf %3, %5 : vector<64x32xf32>
    %cst_5 = arith.constant 0.000000e+00 : f32
    %7 = vector.broadcast %cst_5 : f32 to vector<64x32xf32>
    %8 = arith.cmpf ogt, %6, %7 : vector<64x32xf32>
    %cst_6 = arith.constant 1.000000e-01 : f32
    %9 = vector.broadcast %cst_6 : f32 to vector<64x32xf32>
    %10 = arith.mulf %9, %6 : vector<64x32xf32>
    %11 = arith.select %8, %6, %10 : vector<64x32xi1>, vector<64x32xf32>
    %12 = arith.truncf %11 : vector<64x32xf32> to vector<64x32xbf16>
    %c0_7 = arith.constant 0 : index
    %c0_8 = arith.constant 0 : index
    %13 = vector.load %arg4[%c0_7, %c0_8] : memref<32x52xbf16, #tpu.memory_space<vmem>>, vector<32x52xbf16>
    %cst_9 = arith.constant dense<0.000000e+00> : vector<64x52xf32>
    %14 = tpu.matmul %12, %13, %cst_9 {dimension_numbers = #tpu.dot_dimension_numbers<[1], [0], [0], [1], [0, 0, 1, 1], [], []>} : vector<64x32xbf16>, vector<32x52xbf16>, vector<64x52xf32> -> vector<64x52xf32>
    %c0_10 = arith.constant 0 : index
    %c0_11 = arith.constant 0 : index
    %15 = vector.load %arg5[%c0_10, %c0_11] : memref<1x52xf32, #tpu.memory_space<vmem>>, vector<1x52xf32>
    %16 = vector.broadcast %15 : vector<1x52xf32> to vector<64x52xf32>
    %17 = arith.addf %14, %16 : vector<64x52xf32>
    %18 = vector.extract_strided_slice %17 {offsets = [0, 0], sizes = [64, 20], strides = [1, 1]} : vector<64x52xf32> to vector<64x20xf32>
    %19 = vector.extract_strided_slice %17 {offsets = [0, 20], sizes = [64, 32], strides = [1, 1]} : vector<64x52xf32> to vector<64x32xf32>
    %cst_12 = arith.constant 0.000000e+00 : f32
    %20 = vector.broadcast %cst_12 : f32 to vector<64x32xf32>
    %21 = arith.cmpf ogt, %19, %20 : vector<64x32xf32>
    %cst_13 = arith.constant 1.000000e-01 : f32
    %22 = vector.broadcast %cst_13 : f32 to vector<64x32xf32>
    %23 = arith.mulf %22, %19 : vector<64x32xf32>
    %24 = arith.select %21, %19, %23 : vector<64x32xi1>, vector<64x32xf32>
    %25 = arith.truncf %24 : vector<64x32xf32> to vector<64x32xbf16>
    %c0_14 = arith.constant 0 : index
    %c0_15 = arith.constant 0 : index
    %26 = vector.load %arg6[%c0_14, %c0_15] : memref<32x64xbf16, #tpu.memory_space<vmem>>, vector<32x64xbf16>
    %cst_16 = arith.constant dense<0.000000e+00> : vector<64x64xf32>
    %27 = tpu.matmul %25, %26, %cst_16 {dimension_numbers = #tpu.dot_dimension_numbers<[1], [0], [0], [1], [0, 0, 1, 1], [], []>} : vector<64x32xbf16>, vector<32x64xbf16>, vector<64x64xf32> -> vector<64x64xf32>
    %c0_17 = arith.constant 0 : index
    %c0_18 = arith.constant 0 : index
    %28 = vector.load %arg8[%c0_17, %c0_18] : memref<1x64xf32, #tpu.memory_space<vmem>>, vector<1x64xf32>
    %29 = vector.broadcast %28 : vector<1x64xf32> to vector<64x64xf32>
    %30 = arith.addf %27, %29 : vector<64x64xf32>
    %c0_19 = arith.constant 0 : index
    %c0_20 = arith.constant 0 : index
    %31 = vector.load %arg17[%c0_19, %c0_20] : memref<64x64xf32, #tpu.memory_space<vmem>>, vector<64x64xf32>
    tpu.vector_store %arg17[%c0_19, %c0_20], %30 {strides = array<i32>} : memref<64x64xf32, #tpu.memory_space<vmem>>, vector<64x64xf32>,
    %c0_21 = arith.constant 0 : index
    %c0_22 = arith.constant 0 : index
    %32 = vector.load %arg1[%c0_21, %c0_22] : memref<8x32xf32, #tpu.memory_space<vmem>>, vector<8x32xf32>
    %c0_i32 = arith.constant 0 : i32
    %c8_i32 = arith.constant 8 : i32
    %33 = arith.muli %c0_i32, %c8_i32 : i32
    %34 = arith.index_cast %33 : i32 to index
    %c0_23 = arith.constant 0 : index
    %35 = vector.load %arg17[%34, %c0_23] : memref<64x64xf32, #tpu.memory_space<vmem>>, vector<8x64xf32>
    %36 = arith.truncf %32 : vector<8x32xf32> to vector<8x32xbf16>
    %c0_24 = arith.constant 0 : index
    %c0_25 = arith.constant 0 : index
    %37 = vector.load %arg7[%c0_24, %c0_25] : memref<32x64xbf16, #tpu.memory_space<vmem>>, vector<32x64xbf16>
    %cst_26 = arith.constant dense<0.000000e+00> : vector<8x64xf32>
    %38 = tpu.matmul %36, %37, %cst_26 {dimension_numbers = #tpu.dot_dimension_numbers<[1], [0], [0], [1], [0, 0, 1, 1], [], []>} : vector<8x32xbf16>, vector<32x64xbf16>, vector<8x64xf32> -> vector<8x64xf32>
    %39 = arith.addf %38, %35 : vector<8x64xf32>
    %40 = math.tanh %39 : vector<8x64xf32>
    %41 = vector.extract_strided_slice %40 {offsets = [0, 32], sizes = [8, 32], strides = [1, 1]} : vector<8x64xf32> to vector<8x32xf32>
    %42 = arith.index_cast %33 : i32 to index
    %c0_27 = arith.constant 0 : index
    %43 = vector.load %arg18[%42, %c0_27] : memref<64x32xf32, #tpu.memory_space<vmem>>, vector<8x32xf32>
    tpu.vector_store %arg18[%42, %c0_27], %41 {strides = array<i32>} : memref<64x32xf32, #tpu.memory_space<vmem>>, vector<8x32xf32>,
    %44 = vector.extract_strided_slice %40 {offsets = [0, 0], sizes = [8, 32], strides = [1, 1]} : vector<8x64xf32> to vector<8x32xf32>
    %c1_i32 = arith.constant 1 : i32
    %c8_i32_28 = arith.constant 8 : i32
    %45 = arith.muli %c1_i32, %c8_i32_28 : i32
    %46 = arith.index_cast %45 : i32 to index
    %c0_29 = arith.constant 0 : index
    %47 = vector.load %arg17[%46, %c0_29] : memref<64x64xf32, #tpu.memory_space<vmem>>, vector<8x64xf32>
    %48 = arith.truncf %44 : vector<8x32xf32> to vector<8x32xbf16>
    %c0_30 = arith.constant 0 : index
    %c0_31 = arith.constant 0 : index
    %49 = vector.load %arg7[%c0_30, %c0_31] : memref<32x64xbf16, #tpu.memory_space<vmem>>, vector<32x64xbf16>
    %cst_32 = arith.constant dense<0.000000e+00> : vector<8x64xf32>
    %50 = tpu.matmul %48, %49, %cst_32 {dimension_numbers = #tpu.dot_dimension_numbers<[1], [0], [0], [1], [0, 0, 1, 1], [], []>} : vector<8x32xbf16>, vector<32x64xbf16>, vector<8x64xf32> -> vector<8x64xf32>
    %51 = arith.addf %50, %47 : vector<8x64xf32>
    %52 = math.tanh %51 : vector<8x64xf32>
    %53 = vector.extract_strided_slice %52 {offsets = [0, 32], sizes = [8, 32], strides = [1, 1]} : vector<8x64xf32> to vector<8x32xf32>
    %54 = arith.index_cast %45 : i32 to index
    %c0_33 = arith.constant 0 : index
    %55 = vector.load %arg18[%54, %c0_33] : memref<64x32xf32, #tpu.memory_space<vmem>>, vector<8x32xf32>
    tpu.vector_store %arg18[%54, %c0_33], %53 {strides = array<i32>} : memref<64x32xf32, #tpu.memory_space<vmem>>, vector<8x32xf32>,
    %56 = vector.extract_strided_slice %52 {offsets = [0, 0], sizes = [8, 32], strides = [1, 1]} : vector<8x64xf32> to vector<8x32xf32>
    %c2_i32 = arith.constant 2 : i32
    %c8_i32_34 = arith.constant 8 : i32
    %57 = arith.muli %c2_i32, %c8_i32_34 : i32
    %58 = arith.index_cast %57 : i32 to index
    %c0_35 = arith.constant 0 : index
    %59 = vector.load %arg17[%58, %c0_35] : memref<64x64xf32, #tpu.memory_space<vmem>>, vector<8x64xf32>
    %60 = arith.truncf %56 : vector<8x32xf32> to vector<8x32xbf16>
    %c0_36 = arith.constant 0 : index
    %c0_37 = arith.constant 0 : index
    %61 = vector.load %arg7[%c0_36, %c0_37] : memref<32x64xbf16, #tpu.memory_space<vmem>>, vector<32x64xbf16>
    %cst_38 = arith.constant dense<0.000000e+00> : vector<8x64xf32>
    %62 = tpu.matmul %60, %61, %cst_38 {dimension_numbers = #tpu.dot_dimension_numbers<[1], [0], [0], [1], [0, 0, 1, 1], [], []>} : vector<8x32xbf16>, vector<32x64xbf16>, vector<8x64xf32> -> vector<8x64xf32>
    %63 = arith.addf %62, %59 : vector<8x64xf32>
    %64 = math.tanh %63 : vector<8x64xf32>
    %65 = vector.extract_strided_slice %64 {offsets = [0, 32], sizes = [8, 32], strides = [1, 1]} : vector<8x64xf32> to vector<8x32xf32>
    %66 = arith.index_cast %57 : i32 to index
    %c0_39 = arith.constant 0 : index
    %67 = vector.load %arg18[%66, %c0_39] : memref<64x32xf32, #tpu.memory_space<vmem>>, vector<8x32xf32>
    tpu.vector_store %arg18[%66, %c0_39], %65 {strides = array<i32>} : memref<64x32xf32, #tpu.memory_space<vmem>>, vector<8x32xf32>,
    %68 = vector.extract_strided_slice %64 {offsets = [0, 0], sizes = [8, 32], strides = [1, 1]} : vector<8x64xf32> to vector<8x32xf32>
    %c3_i32 = arith.constant 3 : i32
    %c8_i32_40 = arith.constant 8 : i32
    %69 = arith.muli %c3_i32, %c8_i32_40 : i32
    %70 = arith.index_cast %69 : i32 to index
    %c0_41 = arith.constant 0 : index
    %71 = vector.load %arg17[%70, %c0_41] : memref<64x64xf32, #tpu.memory_space<vmem>>, vector<8x64xf32>
    %72 = arith.truncf %68 : vector<8x32xf32> to vector<8x32xbf16>
    %c0_42 = arith.constant 0 : index
    %c0_43 = arith.constant 0 : index
    %73 = vector.load %arg7[%c0_42, %c0_43] : memref<32x64xbf16, #tpu.memory_space<vmem>>, vector<32x64xbf16>
    %cst_44 = arith.constant dense<0.000000e+00> : vector<8x64xf32>
    %74 = tpu.matmul %72, %73, %cst_44 {dimension_numbers = #tpu.dot_dimension_numbers<[1], [0], [0], [1], [0, 0, 1, 1], [], []>} : vector<8x32xbf16>, vector<32x64xbf16>, vector<8x64xf32> -> vector<8x64xf32>
    %75 = arith.addf %74, %71 : vector<8x64xf32>
    %76 = math.tanh %75 : vector<8x64xf32>
    %77 = vector.extract_strided_slice %76 {offsets = [0, 32], sizes = [8, 32], strides = [1, 1]} : vector<8x64xf32> to vector<8x32xf32>
    %78 = arith.index_cast %69 : i32 to index
    %c0_45 = arith.constant 0 : index
    %79 = vector.load %arg18[%78, %c0_45] : memref<64x32xf32, #tpu.memory_space<vmem>>, vector<8x32xf32>
    tpu.vector_store %arg18[%78, %c0_45], %77 {strides = array<i32>} : memref<64x32xf32, #tpu.memory_space<vmem>>, vector<8x32xf32>,
    %80 = vector.extract_strided_slice %76 {offsets = [0, 0], sizes = [8, 32], strides = [1, 1]} : vector<8x64xf32> to vector<8x32xf32>
    %c4_i32 = arith.constant 4 : i32
    %c8_i32_46 = arith.constant 8 : i32
    %81 = arith.muli %c4_i32, %c8_i32_46 : i32
    %82 = arith.index_cast %81 : i32 to index
    %c0_47 = arith.constant 0 : index
    %83 = vector.load %arg17[%82, %c0_47] : memref<64x64xf32, #tpu.memory_space<vmem>>, vector<8x64xf32>
    %84 = arith.truncf %80 : vector<8x32xf32> to vector<8x32xbf16>
    %c0_48 = arith.constant 0 : index
    %c0_49 = arith.constant 0 : index
    %85 = vector.load %arg7[%c0_48, %c0_49] : memref<32x64xbf16, #tpu.memory_space<vmem>>, vector<32x64xbf16>
    %cst_50 = arith.constant dense<0.000000e+00> : vector<8x64xf32>
    %86 = tpu.matmul %84, %85, %cst_50 {dimension_numbers = #tpu.dot_dimension_numbers<[1], [0], [0], [1], [0, 0, 1, 1], [], []>} : vector<8x32xbf16>, vector<32x64xbf16>, vector<8x64xf32> -> vector<8x64xf32>
    %87 = arith.addf %86, %83 : vector<8x64xf32>
    %88 = math.tanh %87 : vector<8x64xf32>
    %89 = vector.extract_strided_slice %88 {offsets = [0, 32], sizes = [8, 32], strides = [1, 1]} : vector<8x64xf32> to vector<8x32xf32>
    %90 = arith.index_cast %81 : i32 to index
    %c0_51 = arith.constant 0 : index
    %91 = vector.load %arg18[%90, %c0_51] : memref<64x32xf32, #tpu.memory_space<vmem>>, vector<8x32xf32>
    tpu.vector_store %arg18[%90, %c0_51], %89 {strides = array<i32>} : memref<64x32xf32, #tpu.memory_space<vmem>>, vector<8x32xf32>,
    %92 = vector.extract_strided_slice %88 {offsets = [0, 0], sizes = [8, 32], strides = [1, 1]} : vector<8x64xf32> to vector<8x32xf32>
    %c5_i32 = arith.constant 5 : i32
    %c8_i32_52 = arith.constant 8 : i32
    %93 = arith.muli %c5_i32, %c8_i32_52 : i32
    %94 = arith.index_cast %93 : i32 to index
    %c0_53 = arith.constant 0 : index
    %95 = vector.load %arg17[%94, %c0_53] : memref<64x64xf32, #tpu.memory_space<vmem>>, vector<8x64xf32>
    %96 = arith.truncf %92 : vector<8x32xf32> to vector<8x32xbf16>
    %c0_54 = arith.constant 0 : index
    %c0_55 = arith.constant 0 : index
    %97 = vector.load %arg7[%c0_54, %c0_55] : memref<32x64xbf16, #tpu.memory_space<vmem>>, vector<32x64xbf16>
    %cst_56 = arith.constant dense<0.000000e+00> : vector<8x64xf32>
    %98 = tpu.matmul %96, %97, %cst_56 {dimension_numbers = #tpu.dot_dimension_numbers<[1], [0], [0], [1], [0, 0, 1, 1], [], []>} : vector<8x32xbf16>, vector<32x64xbf16>, vector<8x64xf32> -> vector<8x64xf32>
    %99 = arith.addf %98, %95 : vector<8x64xf32>
    %100 = math.tanh %99 : vector<8x64xf32>
    %101 = vector.extract_strided_slice %100 {offsets = [0, 32], sizes = [8, 32], strides = [1, 1]} : vector<8x64xf32> to vector<8x32xf32>
    %102 = arith.index_cast %93 : i32 to index
    %c0_57 = arith.constant 0 : index
    %103 = vector.load %arg18[%102, %c0_57] : memref<64x32xf32, #tpu.memory_space<vmem>>, vector<8x32xf32>
    tpu.vector_store %arg18[%102, %c0_57], %101 {strides = array<i32>} : memref<64x32xf32, #tpu.memory_space<vmem>>, vector<8x32xf32>,
    %104 = vector.extract_strided_slice %100 {offsets = [0, 0], sizes = [8, 32], strides = [1, 1]} : vector<8x64xf32> to vector<8x32xf32>
    %c6_i32 = arith.constant 6 : i32
    %c8_i32_58 = arith.constant 8 : i32
    %105 = arith.muli %c6_i32, %c8_i32_58 : i32
    %106 = arith.index_cast %105 : i32 to index
    %c0_59 = arith.constant 0 : index
    %107 = vector.load %arg17[%106, %c0_59] : memref<64x64xf32, #tpu.memory_space<vmem>>, vector<8x64xf32>
    %108 = arith.truncf %104 : vector<8x32xf32> to vector<8x32xbf16>
    %c0_60 = arith.constant 0 : index
    %c0_61 = arith.constant 0 : index
    %109 = vector.load %arg7[%c0_60, %c0_61] : memref<32x64xbf16, #tpu.memory_space<vmem>>, vector<32x64xbf16>
    %cst_62 = arith.constant dense<0.000000e+00> : vector<8x64xf32>
    %110 = tpu.matmul %108, %109, %cst_62 {dimension_numbers = #tpu.dot_dimension_numbers<[1], [0], [0], [1], [0, 0, 1, 1], [], []>} : vector<8x32xbf16>, vector<32x64xbf16>, vector<8x64xf32> -> vector<8x64xf32>
    %111 = arith.addf %110, %107 : vector<8x64xf32>
    %112 = math.tanh %111 : vector<8x64xf32>
    %113 = vector.extract_strided_slice %112 {offsets = [0, 32], sizes = [8, 32], strides = [1, 1]} : vector<8x64xf32> to vector<8x32xf32>
    %114 = arith.index_cast %105 : i32 to index
    %c0_63 = arith.constant 0 : index
    %115 = vector.load %arg18[%114, %c0_63] : memref<64x32xf32, #tpu.memory_space<vmem>>, vector<8x32xf32>
    tpu.vector_store %arg18[%114, %c0_63], %113 {strides = array<i32>} : memref<64x32xf32, #tpu.memory_space<vmem>>, vector<8x32xf32>,
    %116 = vector.extract_strided_slice %112 {offsets = [0, 0], sizes = [8, 32], strides = [1, 1]} : vector<8x64xf32> to vector<8x32xf32>
    %c7_i32 = arith.constant 7 : i32
    %c8_i32_64 = arith.constant 8 : i32
    %117 = arith.muli %c7_i32, %c8_i32_64 : i32
    %118 = arith.index_cast %117 : i32 to index
    %c0_65 = arith.constant 0 : index
    %119 = vector.load %arg17[%118, %c0_65] : memref<64x64xf32, #tpu.memory_space<vmem>>, vector<8x64xf32>
    %120 = arith.truncf %116 : vector<8x32xf32> to vector<8x32xbf16>
    %c0_66 = arith.constant 0 : index
    %c0_67 = arith.constant 0 : index
    %121 = vector.load %arg7[%c0_66, %c0_67] : memref<32x64xbf16, #tpu.memory_space<vmem>>, vector<32x64xbf16>
    %cst_68 = arith.constant dense<0.000000e+00> : vector<8x64xf32>
    %122 = tpu.matmul %120, %121, %cst_68 {dimension_numbers = #tpu.dot_dimension_numbers<[1], [0], [0], [1], [0, 0, 1, 1], [], []>} : vector<8x32xbf16>, vector<32x64xbf16>, vector<8x64xf32> -> vector<8x64xf32>
    %123 = arith.addf %122, %119 : vector<8x64xf32>
    %124 = math.tanh %123 : vector<8x64xf32>
    %125 = vector.extract_strided_slice %124 {offsets = [0, 32], sizes = [8, 32], strides = [1, 1]} : vector<8x64xf32> to vector<8x32xf32>
    %126 = arith.index_cast %117 : i32 to index
    %c0_69 = arith.constant 0 : index
    %127 = vector.load %arg18[%126, %c0_69] : memref<64x32xf32, #tpu.memory_space<vmem>>, vector<8x32xf32>
    tpu.vector_store %arg18[%126, %c0_69], %125 {strides = array<i32>} : memref<64x32xf32, #tpu.memory_space<vmem>>, vector<8x32xf32>,
    %128 = vector.extract_strided_slice %124 {offsets = [0, 0], sizes = [8, 32], strides = [1, 1]} : vector<8x64xf32> to vector<8x32xf32>
    %c8_i32_70 = arith.constant 8 : i32
    %c0_71 = arith.constant 0 : index
    %c0_72 = arith.constant 0 : index
    %129 = vector.load %arg16[%c0_71, %c0_72] : memref<8x32xf32, #tpu.memory_space<vmem>>, vector<8x32xf32>
    tpu.vector_store %arg16[%c0_71, %c0_72], %128 {strides = array<i32>} : memref<8x32xf32, #tpu.memory_space<vmem>>, vector<8x32xf32>,
    %c0_73 = arith.constant 0 : index
    %c0_74 = arith.constant 0 : index
    %130 = vector.load %arg18[%c0_73, %c0_74] : memref<64x32xf32, #tpu.memory_space<vmem>>, vector<64x32xf32>
    %131 = arith.truncf %130 : vector<64x32xf32> to vector<64x32xbf16>
    %c0_75 = arith.constant 0 : index
    %c0_76 = arith.constant 0 : index
    %132 = vector.load %arg9[%c0_75, %c0_76] : memref<32x128xbf16, #tpu.memory_space<vmem>>, vector<32x128xbf16>
    %cst_77 = arith.constant dense<0.000000e+00> : vector<64x128xf32>
    %133 = tpu.matmul %131, %132, %cst_77 {dimension_numbers = #tpu.dot_dimension_numbers<[1], [0], [0], [1], [0, 0, 1, 1], [], []>} : vector<64x32xbf16>, vector<32x128xbf16>, vector<64x128xf32> -> vector<64x128xf32>
    %c0_78 = arith.constant 0 : index
    %c0_79 = arith.constant 0 : index
    %134 = vector.load %arg10[%c0_78, %c0_79] : memref<1x128xf32, #tpu.memory_space<vmem>>, vector<1x128xf32>
    %135 = vector.broadcast %134 : vector<1x128xf32> to vector<64x128xf32>
    %136 = arith.addf %133, %135 : vector<64x128xf32>
    %137 = arith.negf %136 : vector<64x128xf32>
    %138 = math.exp %137 : vector<64x128xf32>
    %cst_80 = arith.constant 1.000000e+00 : f32
    %139 = vector.broadcast %cst_80 : f32 to vector<64x128xf32>
    %140 = arith.addf %139, %138 : vector<64x128xf32>
    %141 = arith.divf %139, %140 : vector<64x128xf32>
    %142 = arith.truncf %141 : vector<64x128xf32> to vector<64x128xbf16>
    %c0_81 = arith.constant 0 : index
    %c0_82 = arith.constant 0 : index
    %143 = vector.load %arg11[%c0_81, %c0_82] : memref<128x128xbf16, #tpu.memory_space<vmem>>, vector<128x128xbf16>
    %cst_83 = arith.constant dense<0.000000e+00> : vector<64x128xf32>
    %144 = tpu.matmul %142, %143, %cst_83 {dimension_numbers = #tpu.dot_dimension_numbers<[1], [0], [0], [1], [0, 0, 1, 1], [], []>} : vector<64x128xbf16>, vector<128x128xbf16>, vector<64x128xf32> -> vector<64x128xf32>
    %c0_84 = arith.constant 0 : index
    %c0_85 = arith.constant 0 : index
    %145 = vector.load %arg12[%c0_84, %c0_85] : memref<1x128xf32, #tpu.memory_space<vmem>>, vector<1x128xf32>
    %146 = vector.broadcast %145 : vector<1x128xf32> to vector<64x128xf32>
    %147 = arith.addf %144, %146 : vector<64x128xf32>
    %cst_86 = arith.constant 0.000000e+00 : f32
    %148 = vector.broadcast %cst_86 : f32 to vector<64x128xf32>
    %149 = arith.cmpf ogt, %147, %148 : vector<64x128xf32>
    %cst_87 = arith.constant 1.000000e-01 : f32
    %150 = vector.broadcast %cst_87 : f32 to vector<64x128xf32>
    %151 = arith.mulf %150, %147 : vector<64x128xf32>
    %152 = arith.select %149, %147, %151 : vector<64x128xi1>, vector<64x128xf32>
    %153 = arith.truncf %152 : vector<64x128xf32> to vector<64x128xbf16>
    %c0_88 = arith.constant 0 : index
    %c0_89 = arith.constant 0 : index
    %154 = vector.load %arg13[%c0_88, %c0_89] : memref<128x25xbf16, #tpu.memory_space<vmem>>, vector<128x25xbf16>
    %cst_90 = arith.constant dense<0.000000e+00> : vector<64x25xf32>
    %155 = tpu.matmul %153, %154, %cst_90 {dimension_numbers = #tpu.dot_dimension_numbers<[1], [0], [0], [1], [0, 0, 1, 1], [], []>} : vector<64x128xbf16>, vector<128x25xbf16>, vector<64x25xf32> -> vector<64x25xf32>
    %c0_91 = arith.constant 0 : index
    %c0_92 = arith.constant 0 : index
    %156 = vector.load %arg14[%c0_91, %c0_92] : memref<1x25xf32, #tpu.memory_space<vmem>>, vector<1x25xf32>
    %157 = vector.broadcast %156 : vector<1x25xf32> to vector<64x25xf32>
    %158 = arith.addf %155, %157 : vector<64x25xf32>
    %159 = vector.extract_strided_slice %136 {offsets = [0, 0], sizes = [64, 108], strides = [1, 1]} : vector<64x128xf32> to vector<64x108xf32>
    %cst_93 = arith.constant 0.000000e+00 : f32
    %160 = vector.broadcast %cst_93 : f32 to vector<64x103xf32>
    %161 = tpu.concatenate %158, %18, %159, %160 in 1 : vector<64x25xf32>, vector<64x20xf32>, vector<64x108xf32>, vector<64x103xf32> -> vector<64x256xf32>
    %c0_94 = arith.constant 0 : index
    %c0_95 = arith.constant 0 : index
    %162 = vector.load %arg15[%c0_94, %c0_95] : memref<64x256xf32, #tpu.memory_space<vmem>>, vector<64x256xf32>
    tpu.vector_store %arg15[%c0_94, %c0_95], %161 {strides = array<i32>} : memref<64x256xf32, #tpu.memory_space<vmem>>, vector<64x256xf32>,
    return
  }
}

</mosaic_0001>

<bundles_post_ra>
// kernel: tpu_custom_call.1
= control target key start
LH: loop header
LB: loop body
LE: loop exit
PB: predicated region body
PF: predicated region fallthrough
CT: control target
= control target key end

     0   :  { %s2543_s0 = inlined_call_operand.vmem [shape: f32[64,18], index: 0, kind: input, shape index: {}]   ;;  %s2544_s1 = inlined_call_operand.vmem [shape: f32[8,32], index: 1, kind: input, shape index: {}]   ;;  %s2545_s2 = inlined_call_operand.vmem [shape: bf16[18,32], index: 2, kind: input, shape index: {}]   ;;  %s2546_s3 = inlined_call_operand.vmem [shape: f32[1,32], index: 3, kind: input, shape index: {}]   ;;  %s2547_s4 = inlined_call_operand.vmem [shape: bf16[32,52], index: 4, kind: input, shape index: {}]   ;;  %s2548_s5 = inlined_call_operand.vmem [shape: f32[1,52], index: 5, kind: input, shape index: {}]   ;;  %s2549_s6 = inlined_call_operand.vmem [shape: bf16[32,64], index: 6, kind: input, shape index: {}]   ;;  %s2550_s7 = inlined_call_operand.vmem [shape: bf16[32,64], index: 7, kind: input, shape index: {}]   ;;  %s2551_s8 = inlined_call_operand.vmem [shape: f32[1,64], index: 8, kind: input, shape index: {}]   ;;  %s2552_s9 = inlined_call_operand.vmem [shape: bf16[32,128], index: 9, kind: input, shape index: {}]   ;;  %s2553_s10 = inlined_call_operand.vmem [shape: f32[1,128], index: 10, kind: input, shape index: {}]   ;;  %s2554_s11 = inlined_call_operand.vmem [shape: bf16[128,128], index: 11, kind: input, shape index: {}]   ;;  %s2555_s12 = inlined_call_operand.vmem [shape: f32[1,128], index: 12, kind: input, shape index: {}]   ;;  %s2556_s13 = inlined_call_operand.vmem [shape: bf16[128,25], index: 13, kind: input, shape index: {}]   ;;  %s2557_s14 = inlined_call_operand.vmem [shape: f32[1,25], index: 14, kind: input, shape index: {}]   ;;  %s2558_s15 = inlined_call_operand.hbm [shape: f32[64,256], index: 15, kind: output, shape index: {0}]   ;;  %s2559_s16 = inlined_call_operand.hbm [shape: f32[8,32], index: 16, kind: output, shape index: {1}]  }
   0x1   :  { %2561 = sst [smem:[#allocation10_spill]] %s2543_s0 }
   0x2   :  { %22 = vsyncpa [#allocation5], 0  ;;  %v1905_v0 = vld [vmem:[%s2545_s2 + $0x8] ss:$0 sps:$4 sm:$0x11]   ;;  %vm99_vm0 = vcmask 1040384  }
   0x3   :  { %v1906_v1 = vld [vmem:[%s2545_s2] sm:$0xff]   ;;  %1894 = vmatprep.subr.msk.bf16.mxu0 %vm99_vm0, %v1905_v0  ;;  %v101_v2 = vsel %vm99_vm0, %v1905_v0, 0  ;;  %s2562_s27 = sld [smem:[#allocation10_spill]]  ;;  %vm86_vm1 = vcmask 146432  }
   0x4   :  { %1735 = vmatpush3.bf16.msra.mxu0 %v101_v2 }
   0x5   :  { %1736 = vmatprep.subr.bf16.mxu0 %v1906_v1 }
   0x8   :  { %1737 = vmatpush3.bf16.msra.mxu0 %v1906_v1 }
   0x9   :  { %v55_v3 = vld [vmem:[%s2562_s27] sm:$0xff]  ;;  %v56_v4 = vld [vmem:[%s2562_s27 + $0x8] sm:$0xff]  ;;  %v57_v5 = vld [vmem:[%s2562_s27 + $0x10] sm:$0xff] }
   0xa   :  { %v63_v6 = vpack.c.bf16 %v56_v4, %v55_v3  ;;  %v58_v7 = vld [vmem:[%s2562_s27 + $0x18] sm:$0xff] }
   0xb   :  { %v64_v8 = vpack.c.bf16 %v58_v7, %v57_v5 }
   0xc   :  { %1738 = vmatprep.mubr.msk.bf16.mxu0 %vm86_vm1, %v63_v6 }
   0xd   :  { %1739 = vmatmul.mubr.msk.bf16.vlgmr.msra.gmra.mxu0 %vm86_vm1, %v64_v8 }
   0xe   :  { %23 = vsyncpa [#allocation7], 0  ;;  %v1907_v9 = vld [vmem:[%s2547_s4 + $0x8] sm:$0xff]   ;;  %v1908_v10 = vld [vmem:[%s2547_s4] sm:$0xff]   ;;  %vm219_vm6 = vcmask 261120   ;;  %v2037_v40 = vmov 0.0  }
   0xf   :  { %1746 = vmatprep.subr.bf16.mxu1 %v1907_v9  ;;  %v59_v11 = vld [vmem:[%s2562_s27 + $0x20] sm:$0xff]  ;;  %v60_v12 = vld [vmem:[%s2562_s27 + $0x28] sm:$0xff]  ;;  %v61_v13 = vld [vmem:[%s2562_s27 + $0x30] sm:$0xff]  ;;  %vm2038_vm11 = vmmov 0   ;;  %s2041_s21 = smov 25   ;;  %s2042_s29 = smov 45  }
  0x10   :  { %1747 = vmatpush3.bf16.msra.mxu1 %v1907_v9  ;;  %v65_v14 = vpack.c.bf16 %v60_v12, %v59_v11  ;;  %v62_v15 = vld [vmem:[%s2562_s27 + $0x38] sm:$0xff]  ;;  %v1584_v18 = vld [vmem:[%s2546_s3] ss:$0 sm:$0xff]  ;;  %v1909_v37 = vld [vmem:[%s2549_s6 + $0x8] sm:$0xff]  }
  0x11   :  { %1748 = vmatprep.subr.bf16.mxu1 %v1908_v10  ;;  %v66_v16 = vpack.c.bf16 %v62_v15, %v61_v13  ;;  %v1910_v38 = vld [vmem:[%s2549_s6] sm:$0xff]   ;;  %1758 = vmatprep.subr.bf16.mxu0 %v1909_v37  ;;  %v1911_v58 = vld [vmem:[%s2550_s7 + $0x8] sm:$0xff]  }
  0x12   :  { %1742 = vmatprep.mubr.msk.bf16.mxu0 %vm86_vm1, %v65_v14  ;;  %1759 = vmatpush3.bf16.msra.mxu0 %v1909_v37  ;;  %v1591_v59 = vld [vmem:[%s2548_s5] ss:$0 sm:$0xff] }
  0x13   :  { %1760 = vmatprep.subr.bf16.mxu0 %v1910_v38  ;;  %v1912_v0 = vld [vmem:[%s2550_s7] sm:$0xff]  }
  0x14   :  { %1749 = vmatpush3.bf16.msra.mxu1 %v1908_v10  ;;  %v446_v1 = vld [vmem:[%s2544_s1] sm:$0xff]  ;;  %s2039_s1 = smov 108  }
  0x15   :  { %1743 = vmatmul.mubr.msk.bf16.gmra.mxu0 %vm86_vm1, %v66_v16  ;;  %1770 = vmatprep.subr.bf16.mxu1 %v2037_v40  ;;  %v448_v3 = vpack.c.bf16 %v446_v1, %v446_v1 }
  0x16   :  { %1761 = vmatpush3.bf16.msra.mxu0 %v1910_v38 }
  0x17   :  { %1786 = vmatprep.subr.bf16.mxu0 %v2037_v40 }
  0xcd   :  { %v1740_v17 = vpop.f32.mrf.mxu0 }
  0xce   :  { %v146_v21 = vadd.f32 %v1740_v17, %v1584_v18 }
  0xcf   :  { %v137_v19 = vpop.f32.mrf.mxu0 }
  0xd0   :  { %v138_v20 = vadd.f32 %v1584_v18, %v137_v19  ;;  %v178_v28 = vmul.f32 0.1, %v146_v21  ;;  %vm170_vm4 = vcmp.gt.f32.partialorder %v146_v21, 0.0 }
  0xd1   :  { %v1741_v22 = vpop.f32.mrf.mxu0 }
  0xd2   :  { %v149_v23 = vadd.f32 %v1741_v22, %v1584_v18  ;;  %v176_v25 = vmul.f32 0.1, %v138_v20  ;;  %vm168_vm3 = vcmp.gt.f32.partialorder %v138_v20, 0.0  ;;  %v186_v33 = vsel %vm170_vm4, %v146_v21, %v178_v28 }
  0xd3   :  { %v140_v24 = vpop.f32.mrf.mxu0  ;;  %vm437_vm4 = vcmask 523264  }
  0xd4   :  { %vm171_vm2 = vcmp.gt.f32.partialorder %v149_v23, 0.0  ;;  %v179_v26 = vmul.f32 0.1, %v149_v23  ;;  %v141_v27 = vadd.f32 %v1584_v18, %v140_v24  ;;  %v184_v31 = vsel %vm168_vm3, %v138_v20, %v176_v25 }
  0xd5   :  { %v1744_v36 = vpop.f32.mrf.mxu0 }
  0xd6   :  { %v177_v29 = vmul.f32 0.1, %v141_v27  ;;  %vm169_vm5 = vcmp.gt.f32.partialorder %v141_v27, 0.0  ;;  %v187_v30 = vsel %vm171_vm2, %v149_v23, %v179_v26  ;;  %v162_v39 = vadd.f32 %v1744_v36, %v1584_v18 }
  0xd7   :  { %v193_v35 = vpack.c.bf16 %v187_v30, %v186_v33  ;;  %v153_v41 = vpop.f32.mrf.mxu0 }
  0xd8   :  { %v185_v32 = vsel %vm169_vm5, %v141_v27, %v177_v29  ;;  %v154_v42 = vadd.f32 %v1584_v18, %v153_v41  ;;  %v182_v43 = vmul.f32 0.1, %v162_v39  ;;  %vm174_vm7 = vcmp.gt.f32.partialorder %v162_v39, 0.0  ;;  %v1913_v41 = vld [vmem:[%s2550_s7 + $0x8] sm:$0xff]  }
  0xd9   :  { %v192_v34 = vpack.c.bf16 %v185_v32, %v184_v31  ;;  %v1745_v44 = vpop.f32.mrf.mxu0  ;;  %vm1512_vm5 = vcmask 203776  }
  0xda   :  { %v180_v45 = vmul.f32 0.1, %v154_v42  ;;  %v165_v46 = vadd.f32 %v1745_v44, %v1584_v18  ;;  %vm172_vm8 = vcmp.gt.f32.partialorder %v154_v42, 0.0  ;;  %v190_v50 = vsel %vm174_vm7, %v162_v39, %v182_v43 }
  0xdb   :  { %1750 = vmatprep.mubr.msk.bf16.mxu1 %vm219_vm6, %v192_v34  ;;  %v156_v47 = vpop.f32.mrf.mxu0 }
  0xdc   :  { %1751 = vmatmul.mubr.msk.bf16.vlgmr.msra.gmra.mxu1 %vm219_vm6, %v193_v35  ;;  %vm175_vm9 = vcmp.gt.f32.partialorder %v165_v46, 0.0  ;;  %v183_v48 = vmul.f32 0.1, %v165_v46  ;;  %v157_v49 = vadd.f32 %v1584_v18, %v156_v47  ;;  %v188_v51 = vsel %vm172_vm8, %v154_v42, %v180_v45  ;;  %v1914_v42 = vld [vmem:[%s2550_s7] sm:$0xff]  }
  0xdd   :  { %1771 = vmatpush3.bf16.msra.mxu1 %v1911_v58  ;;  %v1598_v45 = vld [vmem:[%s2551_s8] ss:$0 sm:$0xff]  ;;  %s2040_s8 = smov 96   ;;  %v1915_v58 = vld [vmem:[%s2550_s7 + $0x8] sm:$0xff]  }
  0xde   :  { %v191_v52 = vsel %vm175_vm9, %v165_v46, %v183_v48  ;;  %vm173_vm10 = vcmp.gt.f32.partialorder %v157_v49, 0.0  ;;  %v181_v53 = vmul.f32 0.1, %v157_v49  ;;  %1772 = vmatprep.subr.bf16.mxu1 %v2037_v40 }
  0xdf   :  { %v195_v54 = vpack.c.bf16 %v191_v52, %v190_v50 }
  0xe0   :  { %v189_v55 = vsel %vm173_vm10, %v157_v49, %v181_v53 }
  0xe1   :  { %v194_v56 = vpack.c.bf16 %v189_v55, %v188_v51  ;;  %1773 = vmatpush3.bf16.msra.mxu1 %v1912_v0 }
  0xe2   :  { %1778 = vmatprep.subr.bf16.mxu1 %v2037_v40 }
  0xe3   :  { %1754 = vmatprep.mubr.msk.bf16.mxu1 %vm219_vm6, %v194_v56 }
  0xe4   :  { %1755 = vmatmul.mubr.msk.bf16.gmra.mxu1 %vm219_vm6, %v195_v54 }
  0xe5   :  { %1774 = vmatprep.mubr.msk.bf16.mxu1 %vm2038_vm11, %v2037_v40 }
  0xec   :  { %1775 = vmatmul.mubr.msk.bf16.vlgmr.msra.gmra.mxu1 %vm219_vm6, %v448_v3 }
  0xed   :  { %1782 = vmatprep.mubr.msk.bf16.mxu1 %vm2038_vm11, %v2037_v40  ;;  %1779 = vmatpush3.bf16.msra.mxu1 %v1913_v41 }
  0xee   :  { %1780 = vmatprep.subr.bf16.mxu1 %v2037_v40 }
  0xf1   :  { %1781 = vmatpush3.bf16.msra.mxu1 %v1914_v42 }
  0xf2   :  { %1794 = vmatprep.subr.bf16.mxu1 %v2037_v40 }
 0x19c   :  { %v1752_v57 = vpop.f32.mrf.mxu1 }
 0x19d   :  { %v2204_v4 = vadd.f32 %v1752_v57, %v1591_v59 }
 0x19e   :  { %v266_v60 = vpop.f32.mrf.mxu1 }
 0x19f   :  { %v2193_v61 = vadd.f32 %v1591_v59, %v266_v60  ;;  %v307_v9 = vmul.f32 0.1, %v2204_v4  ;;  %vm299_vm15 = vcmp.gt.f32.partialorder %v2204_v4, 0.0 }
 0x1a0   :  { %v1753_v62 = vpop.f32.mrf.mxu1 }
 0x1a1   :  { %v2196_v63 = vadd.f32 %v1753_v62, %v1591_v59  ;;  %v305_v6 = vmul.f32 0.1, %v2193_v61  ;;  %vm297_vm12 = vcmp.gt.f32.partialorder %v2193_v61, 0.0  ;;  %v315_v14 = vsel %vm299_vm15, %v2204_v4, %v307_v9 }
 0x1a2   :  { %v269_v2 = vpop.f32.mrf.mxu1 }
 0x1a3   :  { %v2206_v5 = vadd.f32 %v1591_v59, %v269_v2  ;;  %v308_v7 = vmul.f32 0.1, %v2196_v63  ;;  %vm300_vm14 = vcmp.gt.f32.partialorder %v2196_v63, 0.0  ;;  %v313_v10 = vsel %vm297_vm12, %v2193_v61, %v305_v6 }
 0x1a4   :  { %v1756_v16 = vpop.f32.mrf.mxu1 }
 0x1a5   :  { %vm298_vm13 = vcmp.gt.f32.partialorder %v2206_v5, 0.0  ;;  %v306_v8 = vmul.f32 0.1, %v2206_v5  ;;  %v316_v13 = vsel %vm300_vm14, %v2196_v63, %v308_v7  ;;  %v2226_v18 = vadd.f32 %v1756_v16, %v1591_v59 }
 0x1a6   :  { %v322_v15 = vpack.c.bf16 %v316_v13, %v315_v14  ;;  %v282_v17 = vpop.f32.mrf.mxu1 }
 0x1a7   :  { %v314_v11 = vsel %vm298_vm13, %v2206_v5, %v306_v8  ;;  %v2228_v19 = vadd.f32 %v1591_v59, %v282_v17  ;;  %v311_v24 = vmul.f32 0.1, %v2226_v18  ;;  %vm303_vm1 = vcmp.gt.f32.partialorder %v2226_v18, 0.0  ;;  %v1917_v17 = vld [vmem:[%s2550_s7 + $0x8] sm:$0xff]  }
 0x1a8   :  { %v321_v12 = vpack.c.bf16 %v314_v11, %v313_v10  ;;  %v1757_v20 = vpop.f32.mrf.mxu1 }
 0x1a9   :  { %v2230_v21 = vadd.f32 %v1757_v20, %v1591_v59  ;;  %v309_v22 = vmul.f32 0.1, %v2228_v19  ;;  %vm301_vm0 = vcmp.gt.f32.partialorder %v2228_v19, 0.0  ;;  %v319_v30 = vsel %vm303_vm1, %v2226_v18, %v311_v24  ;;  %v1918_v20 = vld [vmem:[%s2550_s7] sm:$0xff]  }
 0x1aa   :  { %340 = vrot.lane.b32.xlu0 %v321_v12, %s2039_s1  ;;  %v285_v23 = vpop.f32.mrf.mxu1 }
 0x1ab   :  { %v312_v25 = vmul.f32 0.1, %v2230_v21  ;;  %v2236_v26 = vadd.f32 %v1591_v59, %v285_v23  ;;  %vm304_vm2 = vcmp.gt.f32.partialorder %v2230_v21, 0.0  ;;  %v317_v28 = vsel %vm301_vm0, %v2228_v19, %v309_v22  ;;  %v1916_v59 = vld [vmem:[%s2550_s7] sm:$0xff]  }
 0x1ac   :  { %v502_v36 = vpop.f32.mrf.mxu1 }
 0x1ad   :  { %vm302_vm3 = vcmp.gt.f32.partialorder %v2236_v26, 0.0  ;;  %v310_v27 = vmul.f32 0.1, %v2236_v26  ;;  %v320_v31 = vsel %vm304_vm2, %v2230_v21, %v312_v25 }
 0x1ae   :  { %342 = vrot.lane.b32.xlu0 %v322_v15, %s2039_s1  ;;  %v324_v33 = vpack.c.bf16 %v320_v31, %v319_v30  ;;  %v1776_v37 = vpop.f32.mrf.mxu1 }
 0x1af   :  { %v318_v29 = vsel %vm302_vm3, %v2236_v26, %v310_v27 }
 0x1b0   :  { %v323_v32 = vpack.c.bf16 %v318_v29, %v317_v28  ;;  %v505_v38 = vpop.f32.mrf.mxu1 }
 0x1b2   :  { %344 = vrot.lane.b32.xlu1 %v323_v32, %s2039_s1  ;;  %v1777_v39 = vpop.f32.mrf.mxu1  ;;  %v1919_v32 = vld [vmem:[%s2550_s7 + $0x8] sm:$0xff]  }
 0x1b6   :  { %346 = vrot.lane.b32.xlu1 %v324_v33, %s2039_s1  ;;  %v1920_v33 = vld [vmem:[%s2550_s7] sm:$0xff]  }
 0x21c   :  { %v341_v34 = vpop.permute.xlu0 %340 }
 0x21d   :  { %1762 = vmatprep.mubr.msk.bf16.mxu0 %vm219_vm6, %v341_v34 }
 0x220   :  { %v343_v35 = vpop.permute.xlu0 %342 }
 0x221   :  { %1763 = vmatmul.mubr.msk.bf16.vlgmr.msra.gmra.mxu0 %vm219_vm6, %v343_v35 }
 0x222   :  { %1787 = vmatpush3.bf16.msra.mxu0 %v1915_v58 }
 0x223   :  { %1788 = vmatprep.subr.bf16.mxu0 %v2037_v40 }
 0x224   :  { %v345_v43 = vpop.permute.xlu1 %344 }
 0x225   :  { %1766 = vmatprep.mubr.msk.bf16.mxu0 %vm219_vm6, %v345_v43 }
 0x226   :  { %1789 = vmatpush3.bf16.msra.mxu0 %v1916_v59 }
 0x227   :  { %1802 = vmatprep.subr.bf16.mxu0 %v2037_v40 }
 0x228   :  { %v347_v44 = vpop.permute.xlu1 %346 }
 0x229   :  { %1767 = vmatmul.mubr.msk.bf16.gmra.mxu0 %vm219_vm6, %v347_v44  ;;  %v1921_v44 = vld [vmem:[%s2550_s7 + $0x8] sm:$0xff]  }
 0x22a   :  { %1790 = vmatprep.mubr.msk.bf16.mxu0 %vm2038_vm11, %v2037_v40 }
 0x2e1   :  { %v1764_v46 = vpop.f32.mrf.mxu0 }
 0x2e2   :  { %v415_v47 = vadd.f32 %v1764_v46, %v1598_v45 }
 0x2e3   :  { %v406_v48 = vpop.f32.mrf.mxu0 }
 0x2e4   :  { %440 = vst.msk [vmem:[#allocation2 + $0x10] sm:$0xff] %vm437_vm4, %v415_v47  ;;  %v407_v49 = vadd.f32 %v1598_v45, %v406_v48 }
 0x2e5   :  { %v1765_v50 = vpop.f32.mrf.mxu0 }
 0x2e6   :  { %438 = vst.msk [vmem:[#allocation2] sm:$0xff] %vm437_vm4, %v407_v49  ;;  %v418_v51 = vadd.f32 %v1765_v50, %v1598_v45 }
 0x2e7   :  { %v409_v52 = vpop.f32.mrf.mxu0 }
 0x2e8   :  { %441 = vst.msk [vmem:[#allocation2 + $0x18] sm:$0xff] %vm437_vm4, %v418_v51  ;;  %v410_v53 = vadd.f32 %v1598_v45, %v409_v52 }
 0x2e9   :  { %v1768_v60 = vpop.f32.mrf.mxu0 }
 0x2ea   :  { %439 = vst.msk [vmem:[#allocation2 + $0x8] sm:$0xff] %vm437_vm4, %v410_v53  ;;  %v431_v62 = vadd.f32 %v1768_v60, %v1598_v45 }
 0x2eb   :  { %v422_v0 = vpop.f32.mrf.mxu0  ;;  %v581_v23 = vld [vmem:[#allocation2 + $0x10] sm:$0xff] }
 0x2ec   :  { %444 = vst.msk [vmem:[#allocation2 + $0x30] sm:$0xff] %vm437_vm4, %v431_v62  ;;  %v423_v1 = vadd.f32 %v1598_v45, %v422_v0 }
 0x2ed   :  { %v447_v54 = vld [vmem:[#allocation2] sm:$0xff]  ;;  %v1769_v2 = vpop.f32.mrf.mxu0 }
 0x2ee   :  { %v503_v55 = vadd.f32 %v502_v36, %v447_v54  ;;  %442 = vst.msk [vmem:[#allocation2 + $0x20] sm:$0xff] %vm437_vm4, %v423_v1  ;;  %v434_v3 = vadd.f32 %v1769_v2, %v1598_v45 }
 0x2ef   :  { %v425_v6 = vpop.f32.mrf.mxu0  ;;  %v648_v35 = vld [vmem:[#allocation2 + $0x18] sm:$0xff] }
 0x2f0   :  { %1945 = vtanh.f32 %v503_v55  ;;  %445 = vst.msk [vmem:[#allocation2 + $0x38] sm:$0xff] %vm437_vm4, %v434_v3  ;;  %v426_v7 = vadd.f32 %v1598_v45, %v425_v6  ;;  %v1922_v45 = vld [vmem:[%s2550_s7] sm:$0xff]   ;;  %v1923_v55 = vld [vmem:[%s2550_s7 + $0x8] sm:$0xff]  }
 0x2f1   :  { %v514_v9 = vld [vmem:[#allocation2 + $0x8] sm:$0xff] }
 0x2f2   :  { %443 = vst.msk [vmem:[#allocation2 + $0x28] sm:$0xff] %vm437_vm4, %v426_v7 }
 0x2f5   :  { %v715_v47 = vld [vmem:[#allocation2 + $0x20] sm:$0xff] }
 0x2f9   :  { %v782_v59 = vld [vmem:[#allocation2 + $0x28] sm:$0xff] }
 0x2fd   :  { %v1946_v56 = vpop.eup %1945 }
 0x2fe   :  { %510 = vrot.lane.b32.xlu0 %v1946_v56, %s2040_s8  ;;  %v515_v57 = vpack.c.bf16 %v1946_v56, %v1946_v56  ;;  %v1924_v56 = vld [vmem:[%s2550_s7] sm:$0xff]  }
 0x300   :  { %1783 = vmatmul.mubr.msk.bf16.vlgmr.msra.gmra.mxu1 %vm219_vm6, %v515_v57  ;;  %v1925_v57 = vld [vmem:[%s2552_s9 + $0x8] sm:$0xff]  }
 0x301   :  { %1798 = vmatprep.mubr.msk.bf16.mxu1 %vm2038_vm11, %v2037_v40  ;;  %1795 = vmatpush3.bf16.msra.mxu1 %v1917_v17 }
 0x302   :  { %1796 = vmatprep.subr.bf16.mxu1 %v2037_v40 }
 0x305   :  { %1797 = vmatpush3.bf16.msra.mxu1 %v1918_v20 }
 0x306   :  { %1810 = vmatprep.subr.bf16.mxu1 %v2037_v40 }
 0x370   :  { %v511_v8 = vpop.permute.xlu0 %510 }
 0x371   :  { %513 = vst.msk [vmem:[#allocation3] sm:$0xff] %vm219_vm6, %v511_v8 }
 0x378   :  { %v984_v8 = vld [vmem:[#allocation3] sm:$0xff] }
 0x3c0   :  { %v569_v10 = vpop.f32.mrf.mxu1 }
 0x3c1   :  { %v570_v11 = vadd.f32 %v569_v10, %v514_v9  ;;  %v1926_v9 = vld [vmem:[%s2552_s9] sm:$0xff]  }
 0x3c2   :  { %v1784_v12 = vpop.f32.mrf.mxu1 }
 0x3c3   :  { %1947 = vtanh.f32 %v570_v11 }
 0x3c4   :  { %v572_v13 = vpop.f32.mrf.mxu1 }
 0x3c6   :  { %v1785_v14 = vpop.f32.mrf.mxu1 }
 0x3c7   :  { %v1927_v14 = vld [vmem:[%s2550_s7 + $0x8] sm:$0xff]  }
 0x3d0   :  { %v1948_v15 = vpop.eup %1947 }
 0x3d1   :  { %v582_v16 = vpack.c.bf16 %v1948_v15, %v1948_v15  ;;  %577 = vrot.lane.b32.xlu1 %v1948_v15, %s2040_s8  ;;  %v1928_v15 = vld [vmem:[%s2550_s7] sm:$0xff]  }
 0x3d3   :  { %1791 = vmatmul.mubr.msk.bf16.vlgmr.msra.gmra.mxu0 %vm219_vm6, %v582_v16  ;;  %v1929_v16 = vld [vmem:[%s2554_s11 + $0x38] sm:$0xff]  }
 0x3d4   :  { %1806 = vmatprep.mubr.msk.bf16.mxu0 %vm2038_vm11, %v2037_v40  ;;  %1803 = vmatpush3.bf16.msra.mxu0 %v1919_v32 }
 0x3d5   :  { %1804 = vmatprep.subr.bf16.mxu0 %v2037_v40 }
 0x3d8   :  { %1805 = vmatpush3.bf16.msra.mxu0 %v1920_v33 }
 0x3d9   :  { %1818 = vmatprep.subr.bf16.mxu0 %v2037_v40 }
 0x443   :  { %v578_v22 = vpop.permute.xlu1 %577 }
 0x444   :  { %580 = vst.msk [vmem:[#allocation3 + $0x8] sm:$0xff] %vm219_vm6, %v578_v22 }
 0x44b   :  { %v985_v3 = vld [vmem:[#allocation3 + $0x8] sm:$0xff] }
 0x44c   :  { %v992_v10 = vpack.c.bf16 %v985_v3, %v984_v8  ;;  %v1939_v3 = vld [vmem:[%s2556_s13 + $0x28] sm:$0xff]  }
 0x493   :  { %v636_v24 = vpop.f32.mrf.mxu0 }
 0x494   :  { %v637_v25 = vadd.f32 %v636_v24, %v581_v23  ;;  %v849_v24 = vld [vmem:[#allocation2 + $0x30] sm:$0xff] }
 0x495   :  { %v1792_v27 = vpop.f32.mrf.mxu0 }
 0x496   :  { %1949 = vtanh.f32 %v637_v25 }
 0x497   :  { %v639_v28 = vpop.f32.mrf.mxu0 }
 0x499   :  { %v1793_v29 = vpop.f32.mrf.mxu0 }
 0x4a3   :  { %v1950_v30 = vpop.eup %1949 }
 0x4a4   :  { %644 = vrot.lane.b32.xlu0 %v1950_v30, %s2040_s8  ;;  %v649_v31 = vpack.c.bf16 %v1950_v30, %v1950_v30  ;;  %v2360_v30 = vld [vmem:[%s2553_s10] ss:$0 sm:$0xff] }
 0x4a6   :  { %1799 = vmatmul.mubr.msk.bf16.vlgmr.msra.gmra.mxu1 %vm219_vm6, %v649_v31 }
 0x4a7   :  { %1814 = vmatprep.mubr.msk.bf16.mxu1 %vm2038_vm11, %v2037_v40  ;;  %1811 = vmatpush3.bf16.msra.mxu1 %v1921_v44 }
 0x4a8   :  { %1812 = vmatprep.subr.bf16.mxu1 %v2037_v40 }
 0x4ab   :  { %1813 = vmatpush3.bf16.msra.mxu1 %v1922_v45 }
 0x4ac   :  { %1826 = vmatprep.subr.bf16.mxu1 %v2037_v40 }
 0x516   :  { %v645_v34 = vpop.permute.xlu0 %644 }
 0x517   :  { %647 = vst.msk [vmem:[#allocation3 + $0x10] sm:$0xff] %vm219_vm6, %v645_v34 }
 0x51e   :  { %v986_v12 = vld [vmem:[#allocation3 + $0x10] sm:$0xff] }
 0x566   :  { %v703_v36 = vpop.f32.mrf.mxu1 }
 0x567   :  { %v704_v37 = vadd.f32 %v703_v36, %v648_v35 }
 0x568   :  { %v1800_v38 = vpop.f32.mrf.mxu1 }
 0x569   :  { %1951 = vtanh.f32 %v704_v37 }
 0x56a   :  { %v706_v39 = vpop.f32.mrf.mxu1 }
 0x56c   :  { %v1801_v41 = vpop.f32.mrf.mxu1 }
 0x576   :  { %v1952_v42 = vpop.eup %1951 }
 0x577   :  { %711 = vrot.lane.b32.xlu1 %v1952_v42, %s2040_s8  ;;  %v716_v43 = vpack.c.bf16 %v1952_v42, %v1952_v42 }
 0x579   :  { %1807 = vmatmul.mubr.msk.bf16.vlgmr.msra.gmra.mxu0 %vm219_vm6, %v716_v43 }
 0x57a   :  { %1822 = vmatprep.mubr.msk.bf16.mxu0 %vm2038_vm11, %v2037_v40  ;;  %1819 = vmatpush3.bf16.msra.mxu0 %v1923_v55 }
 0x57b   :  { %1820 = vmatprep.subr.bf16.mxu0 %v2037_v40 }
 0x57e   :  { %1821 = vmatpush3.bf16.msra.mxu0 %v1924_v56  ;;  %v1935_v56 = vld [vmem:[%s2554_s11 + $0x8] sm:$0xff]  }
 0x57f   :  { %1834 = vmatprep.subr.bf16.mxu0 %v1925_v57 }
 0x5e9   :  { %v712_v46 = vpop.permute.xlu1 %711 }
 0x5ea   :  { %714 = vst.msk [vmem:[#allocation3 + $0x18] sm:$0xff] %vm219_vm6, %v712_v46  ;;  %v1930_v46 = vld [vmem:[%s2554_s11 + $0x30] sm:$0xff]  }
 0x5f1   :  { %v987_v11 = vld [vmem:[#allocation3 + $0x18] sm:$0xff] }
 0x5f2   :  { %v993_v13 = vpack.c.bf16 %v987_v11, %v986_v12 }
 0x639   :  { %v770_v48 = vpop.f32.mrf.mxu0 }
 0x63a   :  { %v771_v49 = vadd.f32 %v770_v48, %v715_v47  ;;  %v1931_v47 = vld [vmem:[%s2554_s11 + $0x28] sm:$0xff]   ;;  %v1932_v48 = vld [vmem:[%s2554_s11 + $0x20] sm:$0xff]  }
 0x63b   :  { %v1808_v50 = vpop.f32.mrf.mxu0 }
 0x63c   :  { %1953 = vtanh.f32 %v771_v49 }
 0x63d   :  { %v773_v51 = vpop.f32.mrf.mxu0 }
 0x63f   :  { %v1809_v52 = vpop.f32.mrf.mxu0 }
 0x649   :  { %v1954_v53 = vpop.eup %1953 }
 0x64a   :  { %778 = vrot.lane.b32.xlu0 %v1954_v53, %s2040_s8  ;;  %v783_v54 = vpack.c.bf16 %v1954_v53, %v1954_v53 }
 0x64c   :  { %1815 = vmatmul.mubr.msk.bf16.vlgmr.msra.gmra.mxu1 %vm219_vm6, %v783_v54 }
 0x64d   :  { %1830 = vmatprep.mubr.msk.bf16.mxu1 %vm2038_vm11, %v2037_v40  ;;  %1827 = vmatpush3.bf16.msra.mxu1 %v1927_v14 }
 0x64e   :  { %1828 = vmatprep.subr.bf16.mxu1 %v2037_v40 }
 0x651   :  { %1829 = vmatpush3.bf16.msra.mxu1 %v1928_v15 }
 0x652   :  { %1846 = vmatprep.subr.bf16.mxu1 %v1929_v16 }
 0x6bc   :  { %v779_v58 = vpop.permute.xlu0 %778 }
 0x6bd   :  { %781 = vst.msk [vmem:[#allocation3 + $0x20] sm:$0xff] %vm219_vm6, %v779_v58 }
 0x6c4   :  { %v988_v20 = vld [vmem:[#allocation3 + $0x20] sm:$0xff] }
 0x70c   :  { %v837_v60 = vpop.f32.mrf.mxu1 }
 0x70d   :  { %v838_v62 = vadd.f32 %v837_v60, %v782_v59 }
 0x70e   :  { %v1816_v0 = vpop.f32.mrf.mxu1 }
 0x70f   :  { %1955 = vtanh.f32 %v838_v62 }
 0x710   :  { %v840_v1 = vpop.f32.mrf.mxu1 }
 0x711   :  { %v1937_v1 = vld [vmem:[%s2556_s13 + $0x38] sm:$0xff]  }
 0x712   :  { %v1817_v2 = vpop.f32.mrf.mxu1 }
 0x713   :  { %v1938_v2 = vld [vmem:[%s2556_s13 + $0x30] sm:$0xff]  }
 0x71c   :  { %v1956_v6 = vpop.eup %1955 }
 0x71d   :  { %845 = vrot.lane.b32.xlu1 %v1956_v6, %s2040_s8  ;;  %v850_v7 = vpack.c.bf16 %v1956_v6, %v1956_v6 }
 0x71f   :  { %1823 = vmatmul.mubr.msk.bf16.vlgmr.msra.gmra.mxu0 %vm219_vm6, %v850_v7  ;;  %v1940_v7 = vld [vmem:[%s2556_s13 + $0x20] sm:$0xff]  }
 0x720   :  { %1835 = vmatpush3.bf16.msra.mxu0 %v1925_v57  ;;  %1838 = vmatprep.mubr.msk.bf16.mxu0 %vm219_vm6, %v992_v10 }
 0x721   :  { %1836 = vmatprep.subr.bf16.mxu0 %v1926_v9 }
 0x724   :  { %1837 = vmatpush3.bf16.msra.mxu0 %v1926_v9 }
 0x725   :  { %1870 = vmatprep.subr.bf16.mxu0 %v1937_v1 }
 0x727   :  { %1839 = vmatmul.mubr.msk.bf16.vlgmr.msra.gmra.mxu0 %vm219_vm6, %v993_v13 }
 0x728   :  { %1871 = vmatpush3.bf16.msra.mxu0 %v1937_v1 }
 0x729   :  { %1872 = vmatprep.subr.bf16.mxu0 %v1938_v2 }
 0x72c   :  { %1873 = vmatpush3.bf16.msra.mxu0 %v1938_v2  ;;  %v2486_v2 = vld [vmem:[%s2557_s14] ss:$0 sm:$0xff]  ;;  %s2043_s14 = smov [#allocation6]  }
 0x72d   :  { %1874 = vmatprep.subr.bf16.mxu0 %v1939_v3  ;;  %s1572_s25 = sshll.u32 %s2043_s14, 4  ;;  %s1573_s25 = int_to_ptr.vmem [resolvable:$true] %s1572_s25 }
 0x72e   :  { %s1993_s26 = scalar_lea.vmem %s1573_s25, 128  ;;  %p1998_p1 = scmp.lt.s32.totalorder %s1573_s25, %s1573_s25 }
 0x72f   :  { %p1994_p0 = scmp.ne.s32.totalorder %s1573_s25, %s1993_s26  ;;  %p1999_p2 = scmp.lt.s32.totalorder %s1993_s26, %s1993_s26 }
 0x730   :  { %1875 = vmatpush3.bf16.msra.mxu0 %v1939_v3 }
 0x731   :  { %1876 = vmatprep.subr.bf16.mxu0 %v1940_v7  ;;  %p2000_p3 = por %p1999_p2, %p1998_p1 }
 0x733   :  { %p2001_p4 = pnand %p2000_p3, %p1994_p0 }
 0x734   :  { %1877 = vmatpush3.bf16.msra.mxu0 %v1940_v7 }
 0x78f   :  { %v846_v17 = vpop.permute.xlu1 %845 }
 0x790   :  { %848 = vst.msk [vmem:[#allocation3 + $0x28] sm:$0xff] %vm219_vm6, %v846_v17 }
 0x797   :  { %v989_v22 = vld [vmem:[#allocation3 + $0x28] sm:$0xff] }
 0x798   :  { %v994_v23 = vpack.c.bf16 %v989_v22, %v988_v20 }
 0x79a   :  { %1842 = vmatprep.mubr.msk.bf16.mxu0 %vm219_vm6, %v994_v23 }
 0x7df   :  { %v904_v40 = vpop.f32.mrf.mxu0 }
 0x7e0   :  { %v905_v25 = vadd.f32 %v904_v40, %v849_v24  ;;  %v1941_v24 = vld [vmem:[%s2556_s13 + $0x18] sm:$0xff]  }
 0x7e1   :  { %v1824_v27 = vpop.f32.mrf.mxu0  ;;  %1878 = vmatprep.subr.bf16.mxu0 %v1941_v24 }
 0x7e2   :  { %1957 = vtanh.f32 %v905_v25  ;;  %1879 = vmatpush3.bf16.msra.mxu0 %v1941_v24  ;;  %v1942_v25 = vld [vmem:[%s2556_s13 + $0x10] sm:$0xff]   ;;  %v1943_v27 = vld [vmem:[%s2556_s13 + $0x8] sm:$0xff]  }
 0x7e3   :  { %v907_v28 = vpop.f32.mrf.mxu0  ;;  %1880 = vmatprep.subr.bf16.mxu0 %v1942_v25 }
 0x7e4   :  { %v1944_v28 = vld [vmem:[%s2556_s13] sm:$0xff]  }
 0x7e5   :  { %v1825_v29 = vpop.f32.mrf.mxu0 }
 0x7e6   :  { %1881 = vmatpush3.bf16.msra.mxu0 %v1942_v25 }
 0x7e7   :  { %v1840_v31 = vpop.f32.mrf.mxu0  ;;  %1882 = vmatprep.subr.bf16.mxu0 %v1943_v27 }
 0x7e8   :  { %v1074_v32 = vadd.f32 %v1840_v31, %v2360_v30 }
 0x7e9   :  { %v1065_v33 = vpop.f32.mrf.mxu0 }
 0x7ea   :  { %v1066_v34 = vadd.f32 %v2360_v30, %v1065_v33  ;;  %v1638_v35 = vmul.f32 -1.442695, %v1074_v32  ;;  %1883 = vmatpush3.bf16.msra.mxu0 %v1943_v27 }
 0x7eb   :  { %v1841_v36 = vpop.f32.mrf.mxu0  ;;  %1884 = vmatprep.subr.bf16.mxu0 %v1944_v28 }
 0x7ec   :  { %v1636_v37 = vmul.f32 -1.442695, %v1066_v34  ;;  %v2365_v38 = vadd.f32 %v1841_v36, %v2360_v30 }
 0x7ed   :  { %v1068_v39 = vpop.f32.mrf.mxu0 }
 0x7ee   :  { %1959 = vpow2.f32 %v1636_v37  ;;  %v1639_v41 = vmul.f32 -1.442695, %v2365_v38  ;;  %v2369_v42 = vadd.f32 %v2360_v30, %v1068_v39  ;;  %1885 = vmatpush3.bf16.msra.mxu0 %v1944_v28 }
 0x7ef   :  { %v1958_v43 = vpop.eup %1957  ;;  %1961 = vpow2.f32 %v1638_v35 }
 0x7f0   :  { %1963 = vpow2.f32 %v1639_v41  ;;  %v1637_v44 = vmul.f32 -1.442695, %v2369_v42  ;;  %912 = vrot.lane.b32.xlu0 %v1958_v43, %s2040_s8  ;;  %v917_v45 = vpack.c.bf16 %v1958_v43, %v1958_v43 }
 0x7f2   :  { %1965 = vpow2.f32 %v1637_v44  ;;  %1831 = vmatmul.mubr.msk.bf16.vlgmr.msra.gmra.mxu1 %vm219_vm6, %v917_v45 }
 0x7f3   :  { %1847 = vmatpush3.bf16.msra.mxu1 %v1929_v16  ;;  %v916_v16 = vld [vmem:[#allocation2 + $0x38] sm:$0xff] }
 0x7f4   :  { %1456 = vrot.lane.b32.xlu0 %v2193_v61, %s2041_s21  ;;  %1848 = vmatprep.subr.bf16.mxu1 %v1930_v46  ;;  %v1933_v61 = vld [vmem:[%s2554_s11 + $0x18] sm:$0xff]  }
 0x7f7   :  { %1849 = vmatpush3.bf16.msra.mxu1 %v1930_v46 }
 0x7f8   :  { %1460 = vrot.lane.b32.xlu0 %v2204_v4, %s2041_s21  ;;  %1850 = vmatprep.subr.bf16.mxu1 %v1931_v47 }
 0x7fb   :  { %v1960_v49 = vpop.eup %1959  ;;  %1851 = vmatpush3.bf16.msra.mxu1 %v1931_v47 }
 0x7fc   :  { %v1962_v50 = vpop.eup %1961  ;;  %v1120_v51 = vadd.f32 1.0, %v1960_v49  ;;  %1464 = vrot.lane.b32.xlu0 %v2228_v19, %s2041_s21  ;;  %1852 = vmatprep.subr.bf16.mxu1 %v1932_v48  ;;  %v1934_v19 = vld [vmem:[%s2554_s11 + $0x10] sm:$0xff]  }
 0x7fd   :  { %v1964_v52 = vpop.eup %1963  ;;  %v1122_v54 = vadd.f32 1.0, %v1962_v50 }
 0x7fe   :  { %v1123_v53 = vadd.f32 1.0, %v1964_v52  ;;  %1967 = vrcp.f32 %v1120_v51 }
 0x7ff   :  { %v1966_v4 = vpop.eup %1965  ;;  %1853 = vmatpush3.bf16.msra.mxu1 %v1932_v48 }
 0x800   :  { %v1121_v55 = vadd.f32 1.0, %v1966_v4  ;;  %1468 = vrot.lane.b32.xlu0 %v2226_v18, %s2041_s21  ;;  %1854 = vmatprep.subr.bf16.mxu1 %v1933_v61  ;;  %1969 = vrcp.f32 %v1123_v53  ;;  %v1936_v18 = vld [vmem:[%s2554_s11] sm:$0xff]  }
 0x802   :  { %1971 = vrcp.f32 %v1121_v55 }
 0x803   :  { %1973 = vrcp.f32 %v1122_v54  ;;  %1855 = vmatpush3.bf16.msra.mxu1 %v1933_v61 }
 0x804   :  { %1488 = vrot.lane.b32.xlu0 %v1066_v34, %s2042_s29  ;;  %1856 = vmatprep.subr.bf16.mxu1 %v1934_v19 }
 0x807   :  { %1857 = vmatpush3.bf16.msra.mxu1 %v1934_v19 }
 0x808   :  { %1492 = vrot.lane.b32.xlu0 %v1074_v32, %s2042_s29  ;;  %1858 = vmatprep.subr.bf16.mxu1 %v1935_v56 }
 0x80b   :  { %1859 = vmatpush3.bf16.msra.mxu1 %v1935_v56  ;;  %v1968_v57 = vpop.eup %1967 }
 0x80c   :  { %1860 = vmatprep.subr.bf16.mxu1 %v1936_v18 }
 0x80d   :  { %v1970_v58 = vpop.eup %1969 }
 0x80f   :  { %v1972_v59 = vpop.eup %1971  ;;  %1861 = vmatpush3.bf16.msra.mxu1 %v1936_v18 }
 0x810   :  { %v1974_v60 = vpop.eup %1973  ;;  %v1144_v62 = vpack.c.bf16 %v1972_v59, %v1968_v57 }
 0x811   :  { %v1145_v0 = vpack.c.bf16 %v1970_v58, %v1974_v60 }
 0x812   :  { %1862 = vmatprep.mubr.bf16.mxu1 %v1144_v62 }
 0x813   :  { %1863 = vmatmul.mubr.bf16.vlgmr.msra.gmra.mxu1 %v1145_v0 }
 0x862   :  { %v913_v6 = vpop.permute.xlu0 %912 }
 0x863   :  { %915 = vst.msk [vmem:[#allocation3 + $0x30] sm:$0xff] %vm219_vm6, %v913_v6 }
 0x866   :  { %v2418_v8 = vpop.permute.xlu0 %1456 }
 0x86a   :  { %v2420_v9 = vpop.permute.xlu0 %1460  ;;  %v990_v43 = vld [vmem:[#allocation3 + $0x30] sm:$0xff] }
 0x86e   :  { %v2422_v10 = vpop.permute.xlu0 %1464 }
 0x872   :  { %v2424_v11 = vpop.permute.xlu0 %1468 }
 0x876   :  { %v2426_v12 = vpop.permute.xlu0 %1488 }
 0x877   :  { %v1530_v13 = vsel %vm1512_vm5, %v2426_v12, 0.0 }
 0x878   :  { %1539 = vst [vmem:[#allocation4 + $0x8] sm:$0xff] %v1530_v13 }
 0x87a   :  { %v2430_v14 = vpop.permute.xlu0 %1492 }
 0x87b   :  { %v1532_v15 = vsel %vm1512_vm5, %v2430_v14, 0.0 }
 0x87c   :  { %1543 = vst [vmem:[#allocation4 + $0x28] sm:$0xff] %v1532_v15 }
 0x8b2   :  { %v971_v17 = vpop.f32.mrf.mxu1 }
 0x8b3   :  { %v972_v20 = vadd.f32 %v971_v17, %v916_v16 }
 0x8b4   :  { %v1832_v22 = vpop.f32.mrf.mxu1 }
 0x8b5   :  { %1975 = vtanh.f32 %v972_v20 }
 0x8b6   :  { %v974_v23 = vpop.f32.mrf.mxu1 }
 0x8b8   :  { %v1833_v40 = vpop.f32.mrf.mxu1 }
 0x8c2   :  { %v1976_v29 = vpop.eup %1975 }
 0x8c3   :  { %983 = vst.msk [vmem:[#allocation6] sm:$0xff] %vm219_vm6, %v1976_v29  ;;  %979 = vrot.lane.b32.xlu1 %v1976_v29, %s2040_s8 }
 0x8c7   :  { %1458 = vrot.lane.b32.xlu1 %v2206_v5, %s2041_s21 }
 0x8cb   :  { %1462 = vrot.lane.b32.xlu1 %v2196_v63, %s2041_s21  ;;  %v2463_v63 = vld [vmem:[%s2555_s12] ss:$0 sm:$0xff] }
 0x8cf   :  { %1466 = vrot.lane.b32.xlu1 %v2236_v26, %s2041_s21 }
 0x8d3   :  { %1470 = vrot.lane.b32.xlu1 %v2230_v21, %s2041_s21  ;;  %v1864_v31 = vpop.f32.mrf.mxu1 }
 0x8d4   :  { %v1262_v41 = vadd.f32 %v1864_v31, %v2463_v63 }
 0x8d5   :  { %v1253_v32 = vpop.f32.mrf.mxu1 }
 0x8d6   :  { %v1254_v21 = vadd.f32 %v2463_v63, %v1253_v32  ;;  %v1294_v49 = vmul.f32 0.1, %v1262_v41  ;;  %vm1286_vm10 = vcmp.gt.f32.partialorder %v1262_v41, 0.0 }
 0x8d7   :  { %1490 = vrot.lane.b32.xlu1 %v2369_v42, %s2042_s29  ;;  %v1865_v33 = vpop.f32.mrf.mxu1 }
 0x8d8   :  { %v1292_v37 = vmul.f32 0.1, %v1254_v21  ;;  %vm1284_vm8 = vcmp.gt.f32.partialorder %v1254_v21, 0.0  ;;  %v1302_v61 = vsel %vm1286_vm10, %v1262_v41, %v1294_v49 }
 0x8d9   :  { %v1256_v34 = vpop.f32.mrf.mxu1 }
 0x8da   :  { %v1257_v5 = vadd.f32 %v2463_v63, %v1256_v34  ;;  %v1300_v46 = vsel %vm1284_vm8, %v1254_v21, %v1292_v37 }
 0x8db   :  { %1494 = vrot.lane.b32.xlu1 %v2365_v38, %s2042_s29  ;;  %v1265_v38 = vadd.f32 %v1865_v33, %v2463_v63 }
 0x8dc   :  { %v1293_v35 = vmul.f32 0.1, %v1257_v5  ;;  %vm1285_vm7 = vcmp.gt.f32.partialorder %v1257_v5, 0.0 }
 0x8dd   :  { %v1295_v47 = vmul.f32 0.1, %v1265_v38  ;;  %vm1287_vm9 = vcmp.gt.f32.partialorder %v1265_v38, 0.0 }
 0x8de   :  { %v1301_v39 = vsel %vm1285_vm7, %v1257_v5, %v1293_v35 }
 0x8df   :  { %v1308_v48 = vpack.c.bf16 %v1301_v39, %v1300_v46  ;;  %v1303_v51 = vsel %vm1287_vm9, %v1265_v38, %v1295_v47 }
 0x8e0   :  { %v1309_v53 = vpack.c.bf16 %v1303_v51, %v1302_v61 }
 0x935   :  { %v980_v26 = vpop.permute.xlu1 %979 }
 0x936   :  { %982 = vst.msk [vmem:[#allocation3 + $0x38] sm:$0xff] %vm219_vm6, %v980_v26 }
 0x939   :  { %v2468_v36 = vpop.permute.xlu1 %1458 }
 0x93d   :  { %v1463_v42 = vpop.permute.xlu1 %1462  ;;  %v991_v44 = vld [vmem:[#allocation3 + $0x38] sm:$0xff] }
 0x93e   :  { %v995_v45 = vpack.c.bf16 %v991_v44, %v990_v43 }
 0x940   :  { %1843 = vmatmul.mubr.msk.bf16.gmra.mxu0 %vm219_vm6, %v995_v45  ;;  %vm1521_vm6 = vcmask 367616  }
 0x941   :  { %v2473_v50 = vpop.permute.xlu1 %1466  ;;  %1886 = vmatprep.mubr.bf16.mxu0 %v1308_v48 }
 0x945   :  { %v2475_v52 = vpop.permute.xlu1 %1470 }
 0x948   :  { %1887 = vmatmul.mubr.bf16.vlgmr.msra.gmra.mxu0 %v1309_v53 }
 0x949   :  { %v1491_v4 = vpop.permute.xlu1 %1490 }
 0x94a   :  { %v1531_v54 = vsel %vm1512_vm5, %v1491_v4, 0.0 }
 0x94b   :  { %1541 = vst [vmem:[#allocation4 + $0x18] sm:$0xff] %v1531_v54 }
 0x94d   :  { %v1495_v55 = vpop.permute.xlu1 %1494 }
 0x94e   :  { %v1533_v19 = vsel %vm1512_vm5, %v1495_v55, 0.0 }
 0x94f   :  { %1545 = vst [vmem:[#allocation4 + $0x38] sm:$0xff] %v1533_v19 }
 0xa00   :  { %v1844_v56 = vpop.f32.mrf.mxu0 }
 0xa01   :  { %v1090_v18 = vadd.f32 %v1844_v56, %v2360_v30 }
 0xa02   :  { %v1081_v57 = vpop.f32.mrf.mxu0 }
 0xa03   :  { %v1082_v58 = vadd.f32 %v2360_v30, %v1081_v57  ;;  %v1642_v59 = vmul.f32 -1.442695, %v1090_v18 }
 0xa04   :  { %v1845_v60 = vpop.f32.mrf.mxu0 }
 0xa05   :  { %v1640_v62 = vmul.f32 -1.442695, %v1082_v58  ;;  %v1093_v0 = vadd.f32 %v1845_v60, %v2360_v30  ;;  %1496 = vrot.lane.b32.xlu0 %v1082_v58, %s2042_s29 }
 0xa06   :  { %v1084_v1 = vpop.f32.mrf.mxu0 }
 0xa07   :  { %1977 = vpow2.f32 %v1640_v62  ;;  %v1643_v3 = vmul.f32 -1.442695, %v1093_v0  ;;  %v1085_v6 = vadd.f32 %v2360_v30, %v1084_v1 }
 0xa08   :  { %1979 = vpow2.f32 %v1642_v59  ;;  %v1888_v7 = vpop.f32.mrf.mxu0 }
 0xa09   :  { %1981 = vpow2.f32 %v1643_v3  ;;  %v1641_v13 = vmul.f32 -1.442695, %v1085_v6  ;;  %v1426_v15 = vadd.f32 %v1888_v7, %v2486_v2  ;;  %1498 = vrot.lane.b32.xlu1 %v1085_v6, %s2042_s29  ;;  %1500 = vrot.lane.b32.xlu0 %v1090_v18, %s2042_s29 }
 0xa0a   :  { %v1417_v16 = vpop.f32.mrf.mxu0 }
 0xa0b   :  { %1983 = vpow2.f32 %v1641_v13  ;;  %v1515_v17 = vsel %vm1512_vm5, %v1426_v15, %v2420_v9  ;;  %v1418_v20 = vadd.f32 %v2486_v2, %v1417_v16 }
 0xa0c   :  { %v1524_v30 = vsel %vm1521_vm6, %v1515_v17, %v2430_v14  ;;  %v1889_v22 = vpop.f32.mrf.mxu0 }
 0xa0d   :  { %1542 = vst [vmem:[#allocation4 + $0x20] sm:$0xff] %v1524_v30  ;;  %v1513_v23 = vsel %vm1512_vm5, %v1418_v20, %v2418_v8  ;;  %v1429_v24 = vadd.f32 %v1889_v22, %v2486_v2  ;;  %1502 = vrot.lane.b32.xlu1 %v1093_v0, %s2042_s29 }
 0xa0e   :  { %v1522_v40 = vsel %vm1521_vm6, %v1513_v23, %v2426_v12  ;;  %v1420_v25 = vpop.f32.mrf.mxu0 }
 0xa0f   :  { %1538 = vst [vmem:[#allocation4] sm:$0xff] %v1522_v40  ;;  %v1516_v9 = vsel %vm1512_vm5, %v1429_v24, %v1463_v42  ;;  %v1421_v27 = vadd.f32 %v2486_v2, %v1420_v25 }
 0xa10   :  { %v1525_v14 = vsel %vm1521_vm6, %v1516_v9, %v1495_v55 }
 0xa11   :  { %1544 = vst [vmem:[#allocation4 + $0x30] sm:$0xff] %v1525_v14  ;;  %v1514_v28 = vsel %vm1512_vm5, %v1421_v27, %v2468_v36 }
 0xa12   :  { %v1523_v8 = vsel %vm1521_vm6, %v1514_v28, %v1491_v4 }
 0xa13   :  { %1540 = vst [vmem:[#allocation4 + $0x10] sm:$0xff] %v1523_v8 }
 0xa14   :  { %v1978_v29 = vpop.eup %1977 }
 0xa15   :  { %v1980_v31 = vpop.eup %1979  ;;  %v1124_v32 = vadd.f32 1.0, %v1978_v29 }
 0xa16   :  { %v1982_v33 = vpop.eup %1981  ;;  %v1126_v5 = vadd.f32 1.0, %v1980_v31 }
 0xa17   :  { %v1127_v12 = vadd.f32 1.0, %v1982_v33  ;;  %1985 = vrcp.f32 %v1124_v32 }
 0xa18   :  { %v1984_v34 = vpop.eup %1983 }
 0xa19   :  { %v1125_v26 = vadd.f32 1.0, %v1984_v34  ;;  %1987 = vrcp.f32 %v1127_v12 }
 0xa1b   :  { %1989 = vrcp.f32 %v1125_v26 }
 0xa1c   :  { %1991 = vrcp.f32 %v1126_v5 }
 0xa24   :  { %v1986_v21 = vpop.eup %1985 }
 0xa26   :  { %v1988_v35 = vpop.eup %1987 }
 0xa28   :  { %v1990_v37 = vpop.eup %1989 }
 0xa29   :  { %v1992_v38 = vpop.eup %1991  ;;  %v1146_v36 = vpack.c.bf16 %v1990_v37, %v1986_v21 }
 0xa2a   :  { %v1147_v39 = vpack.c.bf16 %v1988_v35, %v1992_v38 }
 0xa2b   :  { %1866 = vmatprep.mubr.bf16.mxu1 %v1146_v36 }
 0xa2c   :  { %1867 = vmatmul.mubr.bf16.gmra.mxu1 %v1147_v39 }
 0xa77   :  { %v1497_v41 = vpop.permute.xlu0 %1496 }
 0xa78   :  { %v1534_v42 = vsel %vm1512_vm5, %v1497_v41, 0.0 }
 0xa79   :  { %1547 = vst [vmem:[#allocation4 + $0x48] sm:$0xff] %v1534_v42 }
 0xa7b   :  { %v1501_v43 = vpop.permute.xlu0 %1500  ;;  %v2510_v44 = vpop.permute.xlu1 %1498 }
 0xa7c   :  { %v1536_v45 = vsel %vm1512_vm5, %v1501_v43, 0.0  ;;  %v1535_v46 = vsel %vm1512_vm5, %v2510_v44, 0.0 }
 0xa7d   :  { %1551 = vst [vmem:[#allocation4 + $0x68] sm:$0xff] %v1536_v45  ;;  %1549 = vst [vmem:[#allocation4 + $0x58] sm:$0xff] %v1535_v46 }
 0xa7f   :  { %v1503_v47 = vpop.permute.xlu1 %1502 }
 0xa80   :  { %v1537_v48 = vsel %vm1512_vm5, %v1503_v47, 0.0 }
 0xa81   :  { %1553 = vst [vmem:[#allocation4 + $0x78] sm:$0xff] %v1537_v48 }
 0xaec   :  { %v1868_v49 = vpop.f32.mrf.mxu1 }
 0xaed   :  { %v1278_v53 = vadd.f32 %v1868_v49, %v2463_v63 }
 0xaee   :  { %v1269_v51 = vpop.f32.mrf.mxu1 }
 0xaef   :  { %v1270_v61 = vadd.f32 %v2463_v63, %v1269_v51  ;;  %v1298_v57 = vmul.f32 0.1, %v1278_v53  ;;  %vm1290_vm13 = vcmp.gt.f32.partialorder %v1278_v53, 0.0 }
 0xaf0   :  { %v1869_v4 = vpop.f32.mrf.mxu1 }
 0xaf1   :  { %v1281_v54 = vadd.f32 %v1869_v4, %v2463_v63  ;;  %v1296_v19 = vmul.f32 0.1, %v1270_v61  ;;  %vm1288_vm12 = vcmp.gt.f32.partialorder %v1270_v61, 0.0  ;;  %v1306_v1 = vsel %vm1290_vm13, %v1278_v53, %v1298_v57 }
 0xaf2   :  { %v1272_v55 = vpop.f32.mrf.mxu1 }
 0xaf3   :  { %vm1291_vm11 = vcmp.gt.f32.partialorder %v1281_v54, 0.0  ;;  %v1299_v56 = vmul.f32 0.1, %v1281_v54  ;;  %v1273_v18 = vadd.f32 %v2463_v63, %v1272_v55  ;;  %v1304_v60 = vsel %vm1288_vm12, %v1270_v61, %v1296_v19 }
 0xaf5   :  { %vm1289_vm14 = vcmp.gt.f32.partialorder %v1273_v18, 0.0  ;;  %v1297_v58 = vmul.f32 0.1, %v1273_v18  ;;  %v1307_v59 = vsel %vm1291_vm11, %v1281_v54, %v1299_v56 }
 0xaf6   :  { %v1311_v3 = vpack.c.bf16 %v1307_v59, %v1306_v1 }
 0xaf7   :  { %v1305_v62 = vsel %vm1289_vm14, %v1273_v18, %v1297_v58 }
 0xaf8   :  { %v1310_v0 = vpack.c.bf16 %v1305_v62, %v1304_v60 }
 0xafa   :  { %1890 = vmatprep.mubr.bf16.mxu0 %v1310_v0 }
 0xafb   :  { %1891 = vmatmul.mubr.bf16.gmra.mxu0 %v1311_v3 }
 0xafc   :  { %2004 = shalt.err (!%p2001_p4)
}
 0xafd   :  { %1575 = dma.vmem_to_hbm [thread:$0]  %s1573_s25, 128, %s2559_s16, [#allocation7]  }
 0xafe   :  { %s2044_s30 = smov [#allocation4]  }
 0xaff   :  { %s1559_s16 = sshll.u32 %s2044_s30, 4  ;;  %s1560_s16 = int_to_ptr.vmem [resolvable:$true] %s1559_s16 }
 0xb00   :  { %s2013_s4 = scalar_lea.vmem %s1560_s16, 2048  ;;  %p2018_p6 = scmp.lt.s32.totalorder %s1560_s16, %s1560_s16 }
 0xb01   :  { %p2014_p5 = scmp.ne.s32.totalorder %s1560_s16, %s2013_s4  ;;  %p2019_p7 = scmp.lt.s32.totalorder %s2013_s4, %s2013_s4 }
 0xb03   :  { %p2020_p8 = por %p2019_p7, %p2018_p6 }
 0xb05   :  { %p2021_p9 = pnand %p2020_p8, %p2014_p5 }
 0xbbb   :  { %v1892_v63 = vpop.f32.mrf.mxu0 }
 0xbbc   :  { %v1442_v6 = vadd.f32 %v1892_v63, %v2486_v2 }
 0xbbd   :  { %v1433_v7 = vpop.f32.mrf.mxu0 }
 0xbbe   :  { %v1519_v13 = vsel %vm1512_vm5, %v1442_v6, %v2424_v11  ;;  %v1434_v15 = vadd.f32 %v2486_v2, %v1433_v7 }
 0xbbf   :  { %v1528_v16 = vsel %vm1521_vm6, %v1519_v13, %v1501_v43  ;;  %v1893_v17 = vpop.f32.mrf.mxu0 }
 0xbc0   :  { %1550 = vst [vmem:[#allocation4 + $0x60] sm:$0xff] %v1528_v16  ;;  %v1517_v20 = vsel %vm1512_vm5, %v1434_v15, %v2422_v10  ;;  %v1445_v30 = vadd.f32 %v1893_v17, %v2486_v2 }
 0xbc1   :  { %v1526_v22 = vsel %vm1521_vm6, %v1517_v20, %v1497_v41  ;;  %v1436_v23 = vpop.f32.mrf.mxu0 }
 0xbc2   :  { %1546 = vst [vmem:[#allocation4 + $0x40] sm:$0xff] %v1526_v22  ;;  %v1520_v11 = vsel %vm1512_vm5, %v1445_v30, %v2475_v52  ;;  %v1437_v24 = vadd.f32 %v2486_v2, %v1436_v23 }
 0xbc3   :  { %v1529_v40 = vsel %vm1521_vm6, %v1520_v11, %v1503_v47 }
 0xbc4   :  { %1552 = vst [vmem:[#allocation4 + $0x70] sm:$0xff] %v1529_v40  ;;  %v1518_v10 = vsel %vm1512_vm5, %v1437_v24, %v2473_v50 }
 0xbc5   :  { %v1527_v25 = vsel %vm1521_vm6, %v1518_v10, %v2510_v44 }
 0xbc6   :  { %1548 = vst [vmem:[#allocation4 + $0x50] sm:$0xff] %v1527_v25 }
 0xbc7   :  { %2024 = shalt.err (!%p2021_p9)
}
 0xbc8   :  { %s2045_s0 = smov 256   ;;  %s2046_s3 = smov 16  }
 0xbc9   :  { %1565 = dma.vmem_to_hbm [thread:$0]  %s1560_s16, 2048, %s2558_s15, [#allocation5], %s2045_s0, %s2045_s0, %s2046_s3  }
 0xbca   :  { %2033 = dma.done.wait [#allocation5], 2048  }
 0xbcb   :  { %2034 = vsyncadd [#allocation5], 4294965248 }
 0xbcc   :  { %2035 = dma.done.wait [#allocation7], 128  }
 0xbcd   :  { %2036 = vsyncadd [#allocation7], 4294967168 }
 0xbce   :  { %1582 = vsyncpa [#allocation5], 1 }
 0xbcf   :  { %1583 = vsyncpa [#allocation7], 1 }

</bundles_post_ra>
